<compile_context>
chip_gen: v7x
topology: tpu7x:2x2x1
jax: 0.10.0
libtpu: 0.0.40
codegen_flags: <defaults>
</compile_context>

<pallas_src>
import jax
import jax.numpy as jnp
from jax.experimental import pallas as pl
from jax.experimental.pallas import tpu as pltpu


def _round_up(n: int, m: int) -> int:
    return (n + m - 1) // m * m


def _default_transcendental_dtype():
    """bf16 tanh on chips with a bf16 EUP (v6e / v7x and newer); f32 otherwise."""
    try:
        kind = jax.devices()[0].device_kind.lower()
    except Exception:
        return jnp.float32
    if "tpu" not in kind:
        return jnp.float32
    if any(g in kind for g in ("v2", "v3", "v4", "v5")):
        return jnp.float32          # no bf16 VPU/EUP on these generations
    return jnp.bfloat16


def _make_mlp_kernel(trans_dtype):
    def kernel(x_ref, w1_ref, b1_ref, w2_ref, b2_ref, o_ref):
        # x_ref : (R, P*F)   packed rows, P samples interleaved per row (f32)
        # w1_ref: (P*F, P*H) block-diagonal replication of W1 (MXU de-interleaves)
        # b1_ref: (1, P*H)   b1 tiled P times
        # w2_ref: (P*H, P)   block-diagonal replication of W2
        # b2_ref: (1, P)
        # o_ref : (R, P)     one scalar per sample, natural packed layout
        z = jnp.dot(x_ref[...], w1_ref[...], preferred_element_type=jnp.float32)
        z = z + b1_ref[...]
        # Sigmoid as a single EUP op per element: sigmoid(z) = 0.5*tanh(z/2)+0.5.
        # The tanh runs in bf16 on v6e/v7x (trans_dtype), f32 elsewhere; the bias
        # add above and the second contraction below stay f32.
        t = jnp.tanh((0.5 * z).astype(trans_dtype)).astype(jnp.float32)
        s = 0.5 * t + 0.5
        y = jnp.dot(s, w2_ref[...], preferred_element_type=jnp.float32)
        o_ref[...] = (y + b2_ref[...]).astype(o_ref.dtype)
    return kernel


def _forward_xla(x, w1, b1, w2, b2):
    """Fused XLA path (reference semantics; used for small batches)."""
    h = jax.nn.sigmoid(x @ w1 + jnp.reshape(b1, (1, -1)))
    return h @ jnp.reshape(w2, (-1, 1)) + jnp.reshape(b2, (1, 1))


def dist_fun_rec_forward(x, w1, b1, w2, b2, *, transcendental_dtype=None,
                         min_pallas_batch=2048, rows_cap=None):
    """Pallas forward of dist_fun_rec.fc1.

    x  : (..., input_feat)                 (leading dims are flattened)
    w1 : (input_feat, hidden_dim)          b1 : (1, hidden_dim) or (hidden_dim,)
    w2 : (hidden_dim, 1)                   b2 : (1, 1) or scalar
    returns (..., 1) in x.dtype
    """
    lead_shape = x.shape[:-1]
    F = x.shape[-1]
    H = w1.shape[1]
    out_dtype = x.dtype

    B = 1
    for d in lead_shape:
        B *= int(d)

    # Small batches (or very wide features): a single tiny grid step would be
    # dominated by fixed launch/pipeline cost -> plain fused XLA matmul+sigmoid.
    if B < min_pallas_batch or F > 128:
        y = _forward_xla(x.reshape(B, F), w1, b1, w2, b2).astype(out_dtype)
        return y.reshape(*lead_shape, 1)

    if transcendental_dtype is None:
        transcendental_dtype = _default_transcendental_dtype()

    P = 128 // F                   # samples packed per row (F=4 -> 32)
    lane_w = P * F                 # 128 when F divides 128

    # Free, contiguous packing: (B, F) -> (B/P, P*F).  Only a ragged tail pays a
    # pad copy (rounded so the packed row count is a multiple of 8 sublanes).
    x2d = x.reshape(B, F)
    if B % P:
        Bp = _round_up(B, 8 * P)
        x2d = jnp.pad(x2d, ((0, Bp - B), (0, 0)))
    else:
        Bp = B
    Rtot = Bp // P
    x_packed = x2d.reshape(Rtot, lane_w)

    # Block-diagonal weight replication (tiny, f32, exact module semantics).
    f32 = jnp.float32
    w1f = w1.astype(f32)                                   # (F, H)
    w2f = jnp.reshape(w2, (H,)).astype(f32)                # (H,)
    b1f = jnp.reshape(b1, (H,)).astype(f32)                # (H,)
    b2f = jnp.reshape(b2, (1, 1)).astype(f32)              # (1, 1)
    eye = jnp.eye(P, dtype=f32)
    w1_big = jnp.transpose(eye[:, :, None, None] * w1f[None, None, :, :],
                           (0, 2, 1, 3)).reshape(P * F, P * H)
    w2_big = jnp.transpose(eye[:, :, None] * w2f[None, None, :],
                           (0, 2, 1)).reshape(P * H, P)
    b1_big = jnp.tile(b1f[None, :], (1, P))                # (1, P*H)
    b2_big = jnp.broadcast_to(b2f, (1, P))                 # (1, P)

    # Tile: ~32K samples (1024 packed rows at F=4/H=16) per grid step so the
    # ~0.35us/step pipeline overhead amortizes; capped so the (R, P*H) f32
    # intermediate stays within ~8 MiB (fits v5e/v6e/v7x VMEM comfortably).
    if rows_cap is None:
        rows_cap = max(64, min(1024, ((8 << 20) // (P * H * 4)) // 8 * 8))
    if Rtot >= 16:
        # Keep >= 2 grid steps so v7x's two TensorCores both get work.
        R = min(rows_cap, _round_up(pl.cdiv(Rtot, 2), 8))
    else:
        R = _round_up(max(Rtot, 1), 8)
    grid = (pl.cdiv(Rtot, R),)

    out_bytes = jnp.dtype(out_dtype).itemsize
    cost = pl.CostEstimate(
        flops=2 * Rtot * (P * F) * (P * H) + 2 * Rtot * (P * H) * P,
        transcendentals=Rtot * P * H,
        bytes_accessed=(Rtot * lane_w * 4            # streamed packed x
                        + Rtot * P * out_bytes       # output
                        + (P * F * P * H + P * H + P * H * P + P) * 4),
    )

    out = pl.pallas_call(
        _make_mlp_kernel(transcendental_dtype),
        out_shape=jax.ShapeDtypeStruct((Rtot, P), out_dtype),
        grid_spec=pltpu.PrefetchScalarGridSpec(
            num_scalar_prefetch=0,
            grid=grid,
            in_specs=[
                pl.BlockSpec((R, lane_w), lambda i: (i, 0)),      # streamed packed x
                pl.BlockSpec((P * F, P * H), lambda i: (0, 0)),   # resident W1 blk-diag
                pl.BlockSpec((1, P * H), lambda i: (0, 0)),       # b1 (tiled)
                pl.BlockSpec((P * H, P), lambda i: (0, 0)),       # resident W2 blk-diag
                pl.BlockSpec((1, P), lambda i: (0, 0)),           # b2
            ],
            out_specs=pl.BlockSpec((R, P), lambda i: (i, 0)),     # packed output
        ),
        compiler_params=pltpu.CompilerParams(
            dimension_semantics=("parallel",),
            vmem_limit_bytes=32 * 1024 * 1024),
        cost_estimate=cost,
    )(x_packed, w1_big, b1_big, w2_big, b2_big)

    # Row-major flatten of the packed output IS the per-sample result (free).
    y = out.reshape(Bp, 1)
    if Bp != B:
        y = y[:B]
    return y.reshape(*lead_shape, 1)


def init_params(key, input_feat, hidden_dim):
    """Deterministic init mimicking nn.Linear's U(-1/sqrt(fan_in), 1/sqrt(fan_in))."""
    k1, k2, k3, k4 = jax.random.split(key, 4)
    bound1 = 1.0 / jnp.sqrt(jnp.float32(input_feat))
    bound2 = 1.0 / jnp.sqrt(jnp.float32(hidden_dim))
    w1 = jax.random.uniform(k1, (input_feat, hidden_dim), jnp.float32, -bound1, bound1)
    b1 = jax.random.uniform(k2, (1, hidden_dim), jnp.float32, -bound1, bound1)
    w2 = jax.random.uniform(k3, (hidden_dim, 1), jnp.float32, -bound2, bound2)
    b2 = jax.random.uniform(k4, (1, 1), jnp.float32, -bound2, bound2)
    return w1, b1, w2, b2


if __name__ == "__main__":
    input_feat = 4
    hidden_dim = 16

    key = jax.random.PRNGKey(0)
    kx1, kx2, kx3, kp = jax.random.split(key, 4)
    w1, b1, w2, b2 = init_params(kp, input_feat, hidden_dim)

    # --- Pallas streaming path: zero-copy packed reshape, 2-step parallel grid.
    B = 8192
    x = jax.random.normal(kx1, (B, input_feat), jnp.float32)
    ref = _forward_xla(x, w1, b1, w2, b2)

    fwd_f32 = jax.jit(lambda xx: dist_fun_rec_forward(
        xx, w1, b1, w2, b2, transcendental_dtype=jnp.float32))
    out = jax.block_until_ready(fwd_f32(x))
    assert out.shape == (B, 1) and out.dtype == x.dtype
    assert jnp.allclose(out, ref, atol=1e-2, rtol=1e-2), "f32 path mismatch"

    fwd_auto = jax.jit(lambda xx: dist_fun_rec_forward(xx, w1, b1, w2, b2))
    out_auto = jax.block_until_ready(fwd_auto(x))   # bf16 tanh on v6e/v7x, f32 on v5e
    assert jnp.allclose(out_auto, ref, atol=2e-2, rtol=2e-2), "auto path mismatch"

    # --- Ragged batch forced onto the Pallas path (exercises the pad branch).
    B2 = 193
    x2 = jax.random.normal(kx2, (B2, input_feat), jnp.float32)
    out2 = jax.block_until_ready(jax.jit(lambda xx: dist_fun_rec_forward(
        xx, w1, b1, w2, b2, transcendental_dtype=jnp.float32,
        min_pallas_batch=0))(x2))
    ref2 = _forward_xla(x2, w1, b1, w2, b2)
    assert out2.shape == (B2, 1)
    assert jnp.allclose(out2, ref2, atol=1e-2, rtol=1e-2), "ragged path mismatch"

    # --- Tiny batch: dispatched to the fused XLA path (launch cost not worth it).
    B3 = 8
    x3 = jax.random.normal(kx3, (B3, input_feat), jnp.float32)
    out3 = jax.block_until_ready(
        jax.jit(lambda xx: dist_fun_rec_forward(xx, w1, b1, w2, b2))(x3))
    ref3 = _forward_xla(x3, w1, b1, w2, b2)
    assert out3.shape == (B3, 1)
    assert jnp.allclose(out3, ref3, atol=1e-2, rtol=1e-2), "small-batch path mismatch"

    # TODO(synk): derivative() (vmap(jacrev)) and functional_loss() are autodiff/
    # RNG-based training utilities, not part of forward(); not implemented as kernels.
    print("KERNEL_OK")
</pallas_src>

<mosaic_0001>
module attributes {stable_mosaic.version = 11 : i64} {
  func.func @kernel(%arg0: i32, %arg1: memref<128x128xf32, #tpu.memory_space<vmem>>, %arg2: memref<128x512xf32, #tpu.memory_space<vmem>>, %arg3: memref<1x512xf32, #tpu.memory_space<vmem>>, %arg4: memref<512x32xf32, #tpu.memory_space<vmem>>, %arg5: memref<1x32xf32, #tpu.memory_space<vmem>>, %arg6: memref<128x32xf32, #tpu.memory_space<vmem>>) attributes {dimension_semantics = [#tpu.dimension_semantics<parallel>], iteration_bounds = array<i64: 2>, scalar_prefetch = 0 : i64, scratch_operands = 0 : i64, tpu.core_type = #tpu.core_type<tc>, window_params = [{transform_indices = @transform_0, window_bounds = array<i64: 128, 128>}, {pipeline_mode = #tpu.pipeline_mode<synchronous>, transform_indices = @transform_1, window_bounds = array<i64: 128, 512>}, {pipeline_mode = #tpu.pipeline_mode<synchronous>, transform_indices = @transform_2, window_bounds = array<i64: 1, 512>}, {pipeline_mode = #tpu.pipeline_mode<synchronous>, transform_indices = @transform_3, window_bounds = array<i64: 512, 32>}, {pipeline_mode = #tpu.pipeline_mode<synchronous>, transform_indices = @transform_4, window_bounds = array<i64: 1, 32>}, {transform_indices = @transform_5, window_bounds = array<i64: 128, 32>}]} {
    %c0 = arith.constant 0 : index
    %c0_0 = arith.constant 0 : index
    %0 = vector.load %arg1[%c0, %c0_0] : memref<128x128xf32, #tpu.memory_space<vmem>>, vector<128x128xf32>
    %c0_1 = arith.constant 0 : index
    %c0_2 = arith.constant 0 : index
    %1 = vector.load %arg2[%c0_1, %c0_2] : memref<128x512xf32, #tpu.memory_space<vmem>>, vector<128x512xf32>
    %cst = arith.constant dense<0.000000e+00> : vector<128x512xf32>
    %2 = tpu.matmul %0, %1, %cst {dimension_numbers = #tpu.dot_dimension_numbers<[1], [0], [0], [1], [0, 0, 1, 1], [], []>} : vector<128x128xf32>, vector<128x512xf32>, vector<128x512xf32> -> vector<128x512xf32>
    %c0_3 = arith.constant 0 : index
    %c0_4 = arith.constant 0 : index
    %3 = vector.load %arg3[%c0_3, %c0_4] : memref<1x512xf32, #tpu.memory_space<vmem>>, vector<1x512xf32>
    %4 = vector.broadcast %3 : vector<1x512xf32> to vector<128x512xf32>
    %5 = arith.addf %2, %4 : vector<128x512xf32>
    %cst_5 = arith.constant 5.000000e-01 : f32
    %6 = vector.broadcast %cst_5 : f32 to vector<128x512xf32>
    %7 = arith.mulf %6, %5 : vector<128x512xf32>
    %8 = math.tanh %7 : vector<128x512xf32>
    %cst_6 = arith.constant 5.000000e-01 : f32
    %9 = vector.broadcast %cst_6 : f32 to vector<128x512xf32>
    %10 = arith.mulf %9, %8 : vector<128x512xf32>
    %cst_7 = arith.constant 5.000000e-01 : f32
    %11 = vector.broadcast %cst_7 : f32 to vector<128x512xf32>
    %12 = arith.addf %10, %11 : vector<128x512xf32>
    %c0_8 = arith.constant 0 : index
    %c0_9 = arith.constant 0 : index
    %13 = vector.load %arg4[%c0_8, %c0_9] : memref<512x32xf32, #tpu.memory_space<vmem>>, vector<512x32xf32>
    %cst_10 = arith.constant dense<0.000000e+00> : vector<128x32xf32>
    %14 = tpu.matmul %12, %13, %cst_10 {dimension_numbers = #tpu.dot_dimension_numbers<[1], [0], [0], [1], [0, 0, 1, 1], [], []>} : vector<128x512xf32>, vector<512x32xf32>, vector<128x32xf32> -> vector<128x32xf32>
    %c0_11 = arith.constant 0 : index
    %c0_12 = arith.constant 0 : index
    %15 = vector.load %arg5[%c0_11, %c0_12] : memref<1x32xf32, #tpu.memory_space<vmem>>, vector<1x32xf32>
    %16 = vector.broadcast %15 : vector<1x32xf32> to vector<128x32xf32>
    %17 = arith.addf %14, %16 : vector<128x32xf32>
    %c0_13 = arith.constant 0 : index
    %c0_14 = arith.constant 0 : index
    %18 = vector.load %arg6[%c0_13, %c0_14] : memref<128x32xf32, #tpu.memory_space<vmem>>, vector<128x32xf32>
    tpu.vector_store %arg6[%c0_13, %c0_14], %17 {strides = array<i32>} : memref<128x32xf32, #tpu.memory_space<vmem>>, vector<128x32xf32>,
    return
  }
  func.func @transform_0(%arg0: i32) -> (i32, i32) {
    %c0_i32 = arith.constant 0 : i32
    %c0_i32_0 = arith.constant 0 : i32
    return %arg0, %c0_i32 : i32, i32
  }
  func.func @transform_1(%arg0: i32) -> (i32, i32) {
    %c0_i32 = arith.constant 0 : i32
    %c0_i32_0 = arith.constant 0 : i32
    %c0_i32_1 = arith.constant 0 : i32
    return %c0_i32, %c0_i32_0 : i32, i32
  }
  func.func @transform_2(%arg0: i32) -> (i32, i32) {
    %c0_i32 = arith.constant 0 : i32
    %c0_i32_0 = arith.constant 0 : i32
    %c0_i32_1 = arith.constant 0 : i32
    return %c0_i32, %c0_i32_0 : i32, i32
  }
  func.func @transform_3(%arg0: i32) -> (i32, i32) {
    %c0_i32 = arith.constant 0 : i32
    %c0_i32_0 = arith.constant 0 : i32
    %c0_i32_1 = arith.constant 0 : i32
    return %c0_i32, %c0_i32_0 : i32, i32
  }
  func.func @transform_4(%arg0: i32) -> (i32, i32) {
    %c0_i32 = arith.constant 0 : i32
    %c0_i32_0 = arith.constant 0 : i32
    %c0_i32_1 = arith.constant 0 : i32
    return %c0_i32, %c0_i32_0 : i32, i32
  }
  func.func @transform_5(%arg0: i32) -> (i32, i32) {
    %c0_i32 = arith.constant 0 : i32
    %c0_i32_0 = arith.constant 0 : i32
    return %arg0, %c0_i32 : i32, i32
  }
}

</mosaic_0001>

<bundles_post_ra>
// kernel: _lambda_.1
= control target key start
LH: loop header
LB: loop body
LE: loop exit
PB: predicated region body
PF: predicated region fallthrough
CT: control target
= control target key end

     0   :  { %s1818_s18 = smov 0   ;;  %s2510_s0 = inlined_call_operand.vmem [shape: f32[256,128], index: 0, kind: input, shape index: {}]   ;;  %s2511_s1 = inlined_call_operand.vmem [shape: f32[128,512], index: 1, kind: input, shape index: {}]   ;;  %s2512_s2 = inlined_call_operand.vmem [shape: f32[1,512], index: 2, kind: input, shape index: {}]   ;;  %s2513_s3 = inlined_call_operand.vmem [shape: f32[512,32], index: 3, kind: input, shape index: {}]   ;;  %s2514_s4 = inlined_call_operand.vmem [shape: f32[1,32], index: 4, kind: input, shape index: {}]   ;;  %s2515_s5 = inlined_call_operand.vmem [shape: f32[256,32], index: 5, kind: output, shape index: {}]  }
   0x1 LB: > { %s1342_s19 = sadd.s32 4294967295, %s1785_s18   ;;  %p1346_p0 = scmp.ge.s32.totalorder %s1785_s18, 1  ;;  %s1785_s18 = sphi %s1818_s18, %s15_s18  }
   0x2   : > { %p188_p1 = scmp.lt.s32.totalorder %s1785_s18, 3 }
   0x4   : > { %p189_p2 = pnand %p1346_p0, %p188_p1 }
   0x5   : > { %v245_v0 = vld [vmem:[%s2511_s1 + $0x8] sm:$0xff] (!%p189_p2)  ;;  %v247_v2 = vld [vmem:[%s2511_s1 + $0x18] sm:$0xff] (!%p189_p2)  ;;  %v244_v5 = vld [vmem:[%s2511_s1] sm:$0xff] (!%p189_p2)  ;;  %v1787_v7 = vmov (!%p189_p2), 0.0   ;;  %s1962_s14 = sshll.u32 (!%p189_p2), %s1342_s19, 4  ;;  %vm1269_vm0 = vcmask (!%p189_p2), 261120  }
   0x6   : > { %192 = sbr.rel (%p189_p2) target bundleno = 570 (0x23a), region = 40  ;;  %v249_v1 = vld [vmem:[%s2511_s1 + $0x28] sm:$0xff] (!%p189_p2)  ;;  %v251_v4 = vld [vmem:[%s2511_s1 + $0x38] sm:$0xff] (!%p189_p2)  ;;  %v248_v6 = vld [vmem:[%s2511_s1 + $0x20] sm:$0xff] (!%p189_p2)  ;;  %394 = vmatprep.mubr.f32.mxu0 (!%p189_p2), %v1787_v7  ;;  %555 = vmatprep.mubr.f32.mxu1 (!%p189_p2), %v1787_v7  ;;  %p217_p3 = scmp.lt.s32.totalorder (!%p189_p2), %s1962_s14, 31 }
   0x7   : > { %v1514_v3 = vpack.c.bf16 (!%p189_p2), %v249_v1, %v245_v0  ;;  %v1546_v8 = vpack.c.bf16 (!%p189_p2), %v251_v4, %v247_v2  ;;  %v1516_v9 = vpack.c.bf16 (!%p189_p2), %v248_v6, %v244_v5  ;;  %v246_v10 = vld [vmem:[%s2511_s1 + $0x10] sm:$0xff] (!%p189_p2)  ;;  %v253_v12 = vld [vmem:[%s2511_s1 + $0x48] sm:$0xff] (!%p189_p2)  ;;  %v255_v15 = vld [vmem:[%s2511_s1 + $0x58] sm:$0xff] (!%p189_p2) }
   0x8   : > { %v250_v11 = vld [vmem:[%s2511_s1 + $0x30] sm:$0xff] (!%p189_p2)  ;;  %v257_v14 = vld [vmem:[%s2511_s1 + $0x68] sm:$0xff] (!%p189_p2)  ;;  %v259_v16 = vld [vmem:[%s2511_s1 + $0x78] sm:$0xff] (!%p189_p2) }
   0x9   : > { %1515 = vmatprep.subr.bf16.mxu0 (!%p189_p2), %v1514_v3  ;;  %v1548_v13 = vpack.c.bf16 (!%p189_p2), %v250_v11, %v246_v10  ;;  %1547 = vmatprep.subr.bf16.mxu1 (!%p189_p2), %v1546_v8  ;;  %v1518_v17 = vpack.c.bf16 (!%p189_p2), %v257_v14, %v253_v12  ;;  %v1550_v18 = vpack.c.bf16 (!%p189_p2), %v259_v16, %v255_v15  ;;  %v252_v19 = vld [vmem:[%s2511_s1 + $0x40] sm:$0xff] (!%p189_p2)  ;;  %v254_v21 = vld [vmem:[%s2511_s1 + $0x50] sm:$0xff] (!%p189_p2)  ;;  %v261_v24 = vld [vmem:[%s2511_s1 + $0x88] sm:$0xff] (!%p189_p2) }
   0xa   : > { %1517 = vmatpush1.bf16.msra.mxu0 (!%p189_p2), %v1516_v9  ;;  %v256_v20 = vld [vmem:[%s2511_s1 + $0x60] sm:$0xff] (!%p189_p2)  ;;  %v258_v23 = vld [vmem:[%s2511_s1 + $0x70] sm:$0xff] (!%p189_p2)  ;;  %v265_v25 = vld [vmem:[%s2511_s1 + $0xa8] sm:$0xff] (!%p189_p2) }
   0xb   : > { %1549 = vmatpush1.bf16.msra.mxu1 (!%p189_p2), %v1548_v13  ;;  %v1520_v22 = vpack.c.bf16 (!%p189_p2), %v256_v20, %v252_v19  ;;  %1519 = vmatprep.subr.bf16.mxu0 (!%p189_p2), %v1518_v17  ;;  %v1552_v26 = vpack.c.bf16 (!%p189_p2), %v258_v23, %v254_v21  ;;  %v1522_v27 = vpack.c.bf16 (!%p189_p2), %v265_v25, %v261_v24  ;;  %v263_v28 = vld [vmem:[%s2511_s1 + $0x98] sm:$0xff] (!%p189_p2)  ;;  %v260_v30 = vld [vmem:[%s2511_s1 + $0x80] sm:$0xff] (!%p189_p2)  ;;  %v262_v33 = vld [vmem:[%s2511_s1 + $0x90] sm:$0xff] (!%p189_p2) }
   0xc   : > { %1551 = vmatprep.subr.bf16.mxu1 (!%p189_p2), %v1550_v18  ;;  %v267_v29 = vld [vmem:[%s2511_s1 + $0xb8] sm:$0xff] (!%p189_p2)  ;;  %v264_v32 = vld [vmem:[%s2511_s1 + $0xa0] sm:$0xff] (!%p189_p2)  ;;  %v266_v34 = vld [vmem:[%s2511_s1 + $0xb0] sm:$0xff] (!%p189_p2) }
   0xd   : > { %v1554_v31 = vpack.c.bf16 %v267_v29, %v263_v28  ;;  %v1524_v35 = vpack.c.bf16 %v264_v32, %v260_v30  ;;  %v269_v36 = vld [vmem:[%s2511_s1 + $0xc8] sm:$0xff]  ;;  %v271_v38 = vld [vmem:[%s2511_s1 + $0xd8] sm:$0xff]  ;;  %v1556_v39 = vpack.c.bf16 %v266_v34, %v262_v33  ;;  %v268_v42 = vld [vmem:[%s2511_s1 + $0xc0] sm:$0xff]  ;;  %s2517_s14 = smov (!%p217_p3, %s1962_s14), 31 }
   0xe   : > { %1521 = vmatpush1.bf16.msra.mxu0 %v1520_v22  ;;  %v273_v37 = vld [vmem:[%s2511_s1 + $0xe8] sm:$0xff]  ;;  %v275_v41 = vld [vmem:[%s2511_s1 + $0xf8] sm:$0xff]  ;;  %v272_v43 = vld [vmem:[%s2511_s1 + $0xe0] sm:$0xff]  ;;  %s1348_s8 = sshll.u32 %s2517_s14, 3 }
   0xf   : > { %1553 = vmatpush1.bf16.msra.mxu1 %v1552_v26  ;;  %1523 = vmatprep.subr.bf16.mxu0 %v1522_v27  ;;  %v1526_v40 = vpack.c.bf16 %v273_v37, %v269_v36  ;;  %v1558_v44 = vpack.c.bf16 %v275_v41, %v271_v38  ;;  %v270_v45 = vld [vmem:[%s2511_s1 + $0xd0] sm:$0xff]  ;;  %v277_v47 = vld [vmem:[%s2511_s1 + $0x108] sm:$0xff]  ;;  %v279_v49 = vld [vmem:[%s2511_s1 + $0x118] sm:$0xff]  ;;  %v1528_v51 = vpack.c.bf16 %v272_v43, %v268_v42  ;;  %s2048_s22 = scalar_lea.vmem %s2510_s0, %s1348_s8  ;;  %s2458_s20 = scalar_lea.vmem %s2515_s5, %s1348_s8 }
  0x10   : > { %1555 = vmatprep.subr.bf16.mxu1 %v1554_v31  ;;  %v274_v46 = vld [vmem:[%s2511_s1 + $0xf0] sm:$0xff]  ;;  %v281_v48 = vld [vmem:[%s2511_s1 + $0x128] sm:$0xff]  ;;  %v283_v50 = vld [vmem:[%s2511_s1 + $0x138] sm:$0xff] }
  0x11   : > { %v1560_v52 = vpack.c.bf16 %v274_v46, %v270_v45  ;;  %v1530_v53 = vpack.c.bf16 %v281_v48, %v277_v47  ;;  %v276_v54 = vld [vmem:[%s2511_s1 + $0x100] sm:$0xff]  ;;  %v278_v56 = vld [vmem:[%s2511_s1 + $0x110] sm:$0xff]  ;;  %v1562_v57 = vpack.c.bf16 %v283_v50, %v279_v49  ;;  %v285_v59 = vld [vmem:[%s2511_s1 + $0x148] sm:$0xff] }
  0x12   : > { %1525 = vmatpush1.bf16.msra.mxu0 %v1524_v35  ;;  %v280_v55 = vld [vmem:[%s2511_s1 + $0x120] sm:$0xff]  ;;  %v282_v58 = vld [vmem:[%s2511_s1 + $0x130] sm:$0xff]  ;;  %v289_v60 = vld [vmem:[%s2511_s1 + $0x168] sm:$0xff] }
  0x13   : > { %1557 = vmatpush1.bf16.msra.mxu1 %v1556_v39  ;;  %1527 = vmatprep.subr.bf16.mxu0 %v1526_v40  ;;  %v287_v61 = vld [vmem:[%s2511_s1 + $0x158] sm:$0xff]  ;;  %v1532_v63 = vpack.c.bf16 %v280_v55, %v276_v54  ;;  %v1564_v0 = vpack.c.bf16 %v282_v58, %v278_v56  ;;  %v1534_v1 = vpack.c.bf16 %v289_v60, %v285_v59  ;;  %v284_v2 = vld [vmem:[%s2511_s1 + $0x140] sm:$0xff]  ;;  %v286_v4 = vld [vmem:[%s2511_s1 + $0x150] sm:$0xff] }
  0x14   : > { %1559 = vmatprep.subr.bf16.mxu1 %v1558_v44  ;;  %v291_v62 = vld [vmem:[%s2511_s1 + $0x178] sm:$0xff]  ;;  %v288_v3 = vld [vmem:[%s2511_s1 + $0x160] sm:$0xff]  ;;  %v290_v6 = vld [vmem:[%s2511_s1 + $0x170] sm:$0xff] }
  0x15   : > { %v1566_v5 = vpack.c.bf16 %v291_v62, %v287_v61  ;;  %v293_v8 = vld [vmem:[%s2511_s1 + $0x188] sm:$0xff]  ;;  %v295_v10 = vld [vmem:[%s2511_s1 + $0x198] sm:$0xff]  ;;  %v1536_v12 = vpack.c.bf16 %v288_v3, %v284_v2  ;;  %v1568_v13 = vpack.c.bf16 %v290_v6, %v286_v4  ;;  %v292_v15 = vld [vmem:[%s2511_s1 + $0x180] sm:$0xff] }
  0x16   : > { %1529 = vmatpush1.bf16.msra.mxu0 %v1528_v51  ;;  %v297_v9 = vld [vmem:[%s2511_s1 + $0x1a8] sm:$0xff]  ;;  %v299_v11 = vld [vmem:[%s2511_s1 + $0x1b8] sm:$0xff]  ;;  %v296_v16 = vld [vmem:[%s2511_s1 + $0x1a0] sm:$0xff] }
  0x17   : > { %1561 = vmatpush1.bf16.msra.mxu1 %v1560_v52  ;;  %1531 = vmatprep.subr.bf16.mxu0 %v1530_v53  ;;  %v1538_v14 = vpack.c.bf16 %v297_v9, %v293_v8  ;;  %v294_v17 = vld [vmem:[%s2511_s1 + $0x190] sm:$0xff]  ;;  %v1570_v18 = vpack.c.bf16 %v299_v11, %v295_v10  ;;  %v301_v20 = vld [vmem:[%s2511_s1 + $0x1c8] sm:$0xff]  ;;  %v303_v22 = vld [vmem:[%s2511_s1 + $0x1d8] sm:$0xff]  ;;  %v1540_v24 = vpack.c.bf16 %v296_v16, %v292_v15 }
  0x18   : > { %1563 = vmatprep.subr.bf16.mxu1 %v1562_v57  ;;  %v298_v19 = vld [vmem:[%s2511_s1 + $0x1b0] sm:$0xff]  ;;  %v305_v21 = vld [vmem:[%s2511_s1 + $0x1e8] sm:$0xff]  ;;  %v307_v23 = vld [vmem:[%s2511_s1 + $0x1f8] sm:$0xff] }
  0x19   : > { %v1572_v25 = vpack.c.bf16 %v298_v19, %v294_v17  ;;  %v1542_v26 = vpack.c.bf16 %v305_v21, %v301_v20  ;;  %v300_v27 = vld [vmem:[%s2511_s1 + $0x1c0] sm:$0xff]  ;;  %v1574_v29 = vpack.c.bf16 %v307_v23, %v303_v22  ;;  %v302_v30 = vld [vmem:[%s2511_s1 + $0x1d0] sm:$0xff]  ;;  %v925_v33 = vld [vmem:[%s2513_s3 + $0x88] sm:$0xff] }
  0x1a   : > { %1533 = vmatpush1.bf16.msra.mxu0 %v1532_v63  ;;  %v304_v28 = vld [vmem:[%s2511_s1 + $0x1e0] sm:$0xff]  ;;  %v306_v31 = vld [vmem:[%s2511_s1 + $0x1f0] sm:$0xff]  ;;  %v957_v36 = vld [vmem:[%s2513_s3 + $0x188] sm:$0xff] }
  0x1b   : > { %1565 = vmatpush1.bf16.msra.mxu1 %v1564_v0  ;;  %1535 = vmatprep.subr.bf16.mxu0 %v1534_v1  ;;  %v924_v32 = vld [vmem:[%s2513_s3 + $0x80] sm:$0xff]  ;;  %v1544_v34 = vpack.c.bf16 %v304_v28, %v300_v27  ;;  %v1576_v37 = vpack.c.bf16 %v306_v31, %v302_v30  ;;  %v909_v40 = vld [vmem:[%s2513_s3 + $0x8] sm:$0xff]  ;;  %v926_v44 = vld [vmem:[%s2513_s3 + $0x90] sm:$0xff] }
  0x1c   : > { %1567 = vmatprep.subr.bf16.mxu1 %v1566_v5  ;;  %v956_v35 = vld [vmem:[%s2513_s3 + $0x180] sm:$0xff]  ;;  %v1578_v38 = vpack.c.bf16 %v925_v33, %v924_v32  ;;  %v941_v43 = vld [vmem:[%s2513_s3 + $0x108] sm:$0xff]  ;;  %v927_v45 = vld [vmem:[%s2513_s3 + $0x98] sm:$0xff] }
  0x1d   : > { %v908_v39 = vld [vmem:[%s2513_s3] sm:$0xff]  ;;  %v1610_v41 = vpack.c.bf16 %v957_v36, %v956_v35  ;;  %v958_v47 = vld [vmem:[%s2513_s3 + $0x190] sm:$0xff]  ;;  %v959_v48 = vld [vmem:[%s2513_s3 + $0x198] sm:$0xff]  ;;  %v1582_v51 = vpack.c.bf16 %v927_v45, %v926_v44 }
  0x1e   : > { %1537 = vmatpush1.bf16.msra.mxu0 %v1536_v12  ;;  %v940_v42 = vld [vmem:[%s2513_s3 + $0x100] sm:$0xff]  ;;  %v1580_v49 = vpack.c.bf16 %v909_v40, %v908_v39  ;;  %v910_v52 = vld [vmem:[%s2513_s3 + $0x10] sm:$0xff]  ;;  %v911_v53 = vld [vmem:[%s2513_s3 + $0x18] sm:$0xff]  ;;  %v1614_v55 = vpack.c.bf16 %v959_v48, %v958_v47 }
  0x1f   : > { %1569 = vmatpush1.bf16.msra.mxu1 %v1568_v13  ;;  %1539 = vmatprep.subr.bf16.mxu0 %v1538_v14  ;;  %v228_v46 = vld [vmem:[%s2048_s22] sm:$0xff]  ;;  %v1612_v50 = vpack.c.bf16 %v941_v43, %v940_v42  ;;  %v942_v54 = vld [vmem:[%s2513_s3 + $0x110] sm:$0xff]  ;;  %v943_v56 = vld [vmem:[%s2513_s3 + $0x118] sm:$0xff]  ;;  %v1584_v62 = vpack.c.bf16 %v911_v53, %v910_v52 }
  0x20   : > { %1571 = vmatprep.subr.bf16.mxu1 %v1570_v18  ;;  %v928_v57 = vld [vmem:[%s2513_s3 + $0xa0] sm:$0xff]  ;;  %v929_v58 = vld [vmem:[%s2513_s3 + $0xa8] sm:$0xff]  ;;  %v1616_v63 = vpack.c.bf16 %v943_v56, %v942_v54  ;;  %v930_v6 = vld [vmem:[%s2513_s3 + $0xb0] sm:$0xff] }
  0x21   : > { %v229_v59 = vld [vmem:[%s2048_s22 + $0x8] sm:$0xff]  ;;  %v960_v60 = vld [vmem:[%s2513_s3 + $0x1a0] sm:$0xff]  ;;  %v1586_v0 = vpack.c.bf16 %v929_v58, %v928_v57  ;;  %v931_v8 = vld [vmem:[%s2513_s3 + $0xb8] sm:$0xff] }
  0x22   : > { %1541 = vmatpush1.bf16.msra.mxu0 %v1540_v24  ;;  %v961_v61 = vld [vmem:[%s2513_s3 + $0x1a8] sm:$0xff]  ;;  %v912_v1 = vld [vmem:[%s2513_s3 + $0x20] sm:$0xff]  ;;  %v230_v9 = vld [vmem:[%s2048_s22 + $0x10] sm:$0xff]  ;;  %v1590_v14 = vpack.c.bf16 %v931_v8, %v930_v6 }
  0x23   : > { %1573 = vmatpush1.bf16.msra.mxu1 %v1572_v25  ;;  %1543 = vmatprep.subr.bf16.mxu0 %v1542_v26  ;;  %v913_v2 = vld [vmem:[%s2513_s3 + $0x28] sm:$0xff]  ;;  %v944_v3 = vld [vmem:[%s2513_s3 + $0x120] sm:$0xff]  ;;  %v1618_v4 = vpack.c.bf16 %v961_v61, %v960_v60  ;;  %v962_v10 = vld [vmem:[%s2513_s3 + $0x1b0] sm:$0xff] }
  0x24   : > { %1575 = vmatprep.subr.bf16.mxu1 %v1574_v29  ;;  %v945_v5 = vld [vmem:[%s2513_s3 + $0x128] sm:$0xff]  ;;  %v963_v11 = vld [vmem:[%s2513_s3 + $0x1b8] sm:$0xff]  ;;  %v1588_v12 = vpack.c.bf16 %v913_v2, %v912_v1  ;;  %v914_v15 = vld [vmem:[%s2513_s3 + $0x30] sm:$0xff] }
  0x25   : > { %v1620_v13 = vpack.c.bf16 %v945_v5, %v944_v3  ;;  %v915_v16 = vld [vmem:[%s2513_s3 + $0x38] sm:$0xff]  ;;  %v946_v17 = vld [vmem:[%s2513_s3 + $0x130] sm:$0xff]  ;;  %v1622_v18 = vpack.c.bf16 %v963_v11, %v962_v10  ;;  %v932_v20 = vld [vmem:[%s2513_s3 + $0xc0] sm:$0xff] }
  0x26   : > { %1545 = vmatpush1.bf16.msra.mxu0 %v1544_v34  ;;  %v947_v19 = vld [vmem:[%s2513_s3 + $0x138] sm:$0xff]  ;;  %v933_v21 = vld [vmem:[%s2513_s3 + $0xc8] sm:$0xff]  ;;  %v964_v23 = vld [vmem:[%s2513_s3 + $0x1c0] sm:$0xff]  ;;  %v1592_v25 = vpack.c.bf16 %v915_v16, %v914_v15 }
  0x27   : > { %1577 = vmatpush1.bf16.msra.mxu1 %v1576_v37  ;;  %1579 = vmatprep.subr.bf16.mxu0 %v1578_v38  ;;  %v231_v22 = vld [vmem:[%s2048_s22 + $0x18] sm:$0xff]  ;;  %v965_v24 = vld [vmem:[%s2513_s3 + $0x1c8] sm:$0xff]  ;;  %v1624_v26 = vpack.c.bf16 %v947_v19, %v946_v17  ;;  %v1594_v27 = vpack.c.bf16 %v933_v21, %v932_v20  ;;  %v916_v28 = vld [vmem:[%s2513_s3 + $0x40] sm:$0xff]  ;;  %v310_v19 = vlaneseq }
  0x28   : > { %1611 = vmatprep.subr.bf16.mxu1 %v1610_v41  ;;  %v917_v29 = vld [vmem:[%s2513_s3 + $0x48] sm:$0xff]  ;;  %v948_v30 = vld [vmem:[%s2513_s3 + $0x140] sm:$0xff]  ;;  %v1626_v31 = vpack.c.bf16 %v965_v24, %v964_v23  ;;  %v934_v33 = vld [vmem:[%s2513_s3 + $0xd0] sm:$0xff] }
  0x29   : > { %395 = vmatmul.mubr.f32.vlgmr.msra.gmra.mrb[0].mxu0 %v228_v46  ;;  %v949_v32 = vld [vmem:[%s2513_s3 + $0x148] sm:$0xff]  ;;  %v935_v34 = vld [vmem:[%s2513_s3 + $0xd8] sm:$0xff]  ;;  %v232_v35 = vld [vmem:[%s2048_s22 + $0x20] sm:$0xff]  ;;  %v1596_v38 = vpack.c.bf16 %v917_v29, %v916_v28  ;;  %v311_v20 = vshrl.u32 %v310_v19, 7 }
  0x2a   : > { %556 = vmatmul.mubr.f32.vlgmr.msra.gmra.mrb[0].mxu1 %v228_v46  ;;  %400 = vmatprep.mubr.f32.mxu0 %v1787_v7  ;;  %v966_v36 = vld [vmem:[%s2513_s3 + $0x1d0] sm:$0xff]  ;;  %v967_v37 = vld [vmem:[%s2513_s3 + $0x1d8] sm:$0xff]  ;;  %v1628_v39 = vpack.c.bf16 %v949_v32, %v948_v30  ;;  %v1598_v40 = vpack.c.bf16 %v935_v34, %v934_v33  ;;  %v233_v44 = vld [vmem:[%s2048_s22 + $0x28] sm:$0xff] }
  0x2b   : > { %561 = vmatprep.mubr.f32.mxu1 %v1787_v7  ;;  %1581 = vmatpush3.bf16.msra.mxu0 %v1580_v49  ;;  %v918_v41 = vld [vmem:[%s2513_s3 + $0x50] sm:$0xff]  ;;  %v919_v42 = vld [vmem:[%s2513_s3 + $0x58] sm:$0xff]  ;;  %v1630_v43 = vpack.c.bf16 %v967_v37, %v966_v36  ;;  %v236_v48 = vld [vmem:[%s2048_s22 + $0x40] sm:$0xff]  ;;  %v312_v21 = vsub.s32 0, %v311_v20  ;;  %v320_v23 = vsub.s32 2, %v311_v20  ;;  %v316_v24 = vsub.s32 1, %v311_v20 }
  0x2c   : > { %1613 = vmatpush3.bf16.msra.mxu1 %v1612_v50  ;;  %1583 = vmatprep.subr.bf16.mxu0 %v1582_v51  ;;  %v1600_v45 = vpack.c.bf16 %v919_v42, %v918_v41  ;;  %v234_v46 = vld [vmem:[%s2048_s22 + $0x30] sm:$0xff]  ;;  %v235_v47 = vld [vmem:[%s2048_s22 + $0x38] sm:$0xff]  ;;  %v237_v49 = vld [vmem:[%s2048_s22 + $0x48] sm:$0xff] }
  0x2d   : > { %401 = vmatmul.mubr.f32.gmra.mrb[2].mxu0 %v229_v59  ;;  %1615 = vmatprep.subr.bf16.mxu1 %v1614_v55  ;;  %v238_v50 = vld [vmem:[%s2048_s22 + $0x50] sm:$0xff]  ;;  %v239_v51 = vld [vmem:[%s2048_s22 + $0x58] sm:$0xff]  ;;  %v240_v52 = vld [vmem:[%s2048_s22 + $0x60] sm:$0xff] }
  0x2e   : > { %562 = vmatmul.mubr.f32.gmra.mrb[2].mxu1 %v229_v59  ;;  %406 = vmatprep.mubr.f32.mxu0 %v1787_v7  ;;  %v241_v53 = vld [vmem:[%s2048_s22 + $0x68] sm:$0xff]  ;;  %v242_v54 = vld [vmem:[%s2048_s22 + $0x70] sm:$0xff]  ;;  %v243_v55 = vld [vmem:[%s2048_s22 + $0x78] sm:$0xff] }
  0x2f   : > { %567 = vmatprep.mubr.f32.mxu1 %v1787_v7  ;;  %1585 = vmatpush3.bf16.msra.mxu0 %v1584_v62  ;;  %v950_v56 = vld [vmem:[%s2513_s3 + $0x150] sm:$0xff]  ;;  %v951_v57 = vld [vmem:[%s2513_s3 + $0x158] sm:$0xff]  ;;  %v936_v59 = vld [vmem:[%s2513_s3 + $0xe0] sm:$0xff] }
  0x30   : > { %1617 = vmatpush3.bf16.msra.mxu1 %v1616_v63  ;;  %1587 = vmatprep.subr.bf16.mxu0 %v1586_v0  ;;  %v1632_v58 = vpack.c.bf16 %v951_v57, %v950_v56  ;;  %v968_v60 = vld [vmem:[%s2513_s3 + $0x1e0] sm:$0xff]  ;;  %v921_v63 = vld [vmem:[%s2513_s3 + $0x68] sm:$0xff]  ;;  %v938_v6 = vld [vmem:[%s2513_s3 + $0xf0] sm:$0xff] }
  0x31   : > { %407 = vmatmul.mubr.f32.gmra.mrb[4].mxu0 %v230_v9  ;;  %1619 = vmatprep.subr.bf16.mxu1 %v1618_v4  ;;  %v920_v62 = vld [vmem:[%s2513_s3 + $0x60] sm:$0xff]  ;;  %v969_v0 = vld [vmem:[%s2513_s3 + $0x1e8] sm:$0xff]  ;;  %v939_v8 = vld [vmem:[%s2513_s3 + $0xf8] sm:$0xff] }
  0x32   : > { %568 = vmatmul.mubr.f32.gmra.mrb[4].mxu1 %v230_v9  ;;  %412 = vmatprep.mubr.f32.mxu0 %v1787_v7  ;;  %v1604_v1 = vpack.c.bf16 %v921_v63, %v920_v62  ;;  %v1634_v2 = vpack.c.bf16 %v969_v0, %v968_v60  ;;  %v952_v3 = vld [vmem:[%s2513_s3 + $0x160] sm:$0xff]  ;;  %v953_v4 = vld [vmem:[%s2513_s3 + $0x168] sm:$0xff]  ;;  %v970_v9 = vld [vmem:[%s2513_s3 + $0x1f0] sm:$0xff]  ;;  %v1606_v10 = vpack.c.bf16 %v939_v8, %v938_v6 }
  0x33   : > { %573 = vmatprep.mubr.f32.mxu1 %v1787_v7  ;;  %1589 = vmatpush3.bf16.msra.mxu0 %v1588_v12  ;;  %v1636_v5 = vpack.c.bf16 %v953_v4, %v952_v3  ;;  %v922_v11 = vld [vmem:[%s2513_s3 + $0x70] sm:$0xff]  ;;  %v923_v12 = vld [vmem:[%s2513_s3 + $0x78] sm:$0xff] }
  0x34   : > { %1621 = vmatpush3.bf16.msra.mxu1 %v1620_v13  ;;  %1591 = vmatprep.subr.bf16.mxu0 %v1590_v14  ;;  %v971_v13 = vld [vmem:[%s2513_s3 + $0x1f8] sm:$0xff]  ;;  %v1608_v14 = vpack.c.bf16 %v923_v12, %v922_v11  ;;  %v954_v16 = vld [vmem:[%s2513_s3 + $0x170] sm:$0xff] }
  0x35   : > { %413 = vmatmul.mubr.f32.gmra.mrb[6].mxu0 %v231_v22  ;;  %1623 = vmatprep.subr.bf16.mxu1 %v1622_v18  ;;  %v1638_v15 = vpack.c.bf16 %v971_v13, %v970_v9  ;;  %v955_v17 = vld [vmem:[%s2513_s3 + $0x178] sm:$0xff] }
  0x36   : > { %574 = vmatmul.mubr.f32.gmra.mrb[6].mxu1 %v231_v22  ;;  %418 = vmatprep.mubr.f32.mxu0 %v1787_v7  ;;  %v1640_v18 = vpack.c.bf16 %v955_v17, %v954_v16  ;;  %v308_v22 = vld [vmem:[%s2512_s2] sm:$0xf] }
  0x37   : > { %579 = vmatprep.mubr.f32.mxu1 %v1787_v7  ;;  %1593 = vmatpush3.bf16.msra.mxu0 %v1592_v25  ;;  %v324_v25 = vsub.s32 3, %v311_v20  ;;  %v2283_v28 = vrot.slane %v308_v22, %v316_v24 }
  0x38   : > { %1625 = vmatpush3.bf16.msra.mxu1 %v1624_v26  ;;  %1595 = vmatprep.subr.bf16.mxu0 %v1594_v27  ;;  %v2279_v26 = vrot.slane %v308_v22, %v312_v21  ;;  %v2281_v27 = vrot.slane %v308_v22, %v320_v23 }
  0x39   : > { %419 = vmatmul.mubr.f32.gmra.mrb[8].mxu0 %v232_v35  ;;  %1627 = vmatprep.subr.bf16.mxu1 %v1626_v31  ;;  %v2285_v29 = vrot.slane %v308_v22, %v324_v25 }
  0x3a   : > { %580 = vmatmul.mubr.f32.gmra.mrb[8].mxu1 %v232_v35  ;;  %424 = vmatprep.mubr.f32.mxu0 %v1787_v7 }
  0x3b   : > { %585 = vmatprep.mubr.f32.mxu1 %v1787_v7  ;;  %1597 = vmatpush3.bf16.msra.mxu0 %v1596_v38 }
  0x3c   : > { %1629 = vmatpush3.bf16.msra.mxu1 %v1628_v39  ;;  %1599 = vmatprep.subr.bf16.mxu0 %v1598_v40 }
  0x3d   : > { %425 = vmatmul.mubr.f32.gmra.mrb[10].mxu0 %v233_v44  ;;  %1631 = vmatprep.subr.bf16.mxu1 %v1630_v43 }
  0x3e   : > { %586 = vmatmul.mubr.f32.gmra.mrb[10].mxu1 %v233_v44  ;;  %430 = vmatprep.mubr.f32.mxu0 %v1787_v7 }
  0x3f   : > { %591 = vmatprep.mubr.f32.mxu1 %v1787_v7  ;;  %1601 = vmatpush3.bf16.msra.mxu0 %v1600_v45 }
  0x40   : > { %1633 = vmatpush3.bf16.msra.mxu1 %v1632_v58 }
  0x41   : > { %431 = vmatmul.mubr.f32.gmra.mrb[12].mxu0 %v234_v46  ;;  %1635 = vmatprep.subr.bf16.mxu1 %v1634_v2 }
  0x42   : > { %592 = vmatmul.mubr.f32.gmra.mrb[12].mxu1 %v234_v46  ;;  %436 = vmatprep.mubr.f32.mxu0 %v1787_v7 }
  0x43   : > { %597 = vmatprep.mubr.f32.mxu1 %v1787_v7 }
  0x44   : > { %1637 = vmatpush3.bf16.msra.mxu1 %v1636_v5 }
  0x45   : > { %437 = vmatmul.mubr.f32.gmra.mrb[14].mxu0 %v235_v47  ;;  %1639 = vmatprep.subr.bf16.mxu1 %v1638_v15 }
  0x46   : > { %598 = vmatmul.mubr.f32.gmra.mrb[14].mxu1 %v235_v47  ;;  %442 = vmatprep.mubr.f32.mxu0 %v1787_v7 }
  0x47   : > { %603 = vmatprep.mubr.f32.mxu1 %v1787_v7 }
  0x48   : > { %1641 = vmatpush3.bf16.msra.mxu1 %v1640_v18 }
  0x49   : > { %443 = vmatmul.mubr.f32.gmra.mrb[16].mxu0 %v236_v48 }
  0x4a   : > { %604 = vmatmul.mubr.f32.gmra.mrb[16].mxu1 %v236_v48  ;;  %448 = vmatprep.mubr.f32.mxu0 %v1787_v7 }
  0x4b   : > { %609 = vmatprep.mubr.f32.mxu1 %v1787_v7 }
  0x4d   : > { %449 = vmatmul.mubr.f32.gmra.mrb[18].mxu0 %v237_v49 }
  0x4e   : > { %610 = vmatmul.mubr.f32.gmra.mrb[18].mxu1 %v237_v49  ;;  %454 = vmatprep.mubr.f32.mxu0 %v1787_v7 }
  0x4f   : > { %615 = vmatprep.mubr.f32.mxu1 %v1787_v7 }
  0x51   : > { %455 = vmatmul.mubr.f32.gmra.mrb[20].mxu0 %v238_v50 }
  0x52   : > { %616 = vmatmul.mubr.f32.gmra.mrb[20].mxu1 %v238_v50  ;;  %460 = vmatprep.mubr.f32.mxu0 %v1787_v7 }
  0x53   : > { %621 = vmatprep.mubr.f32.mxu1 %v1787_v7 }
  0x55   : > { %461 = vmatmul.mubr.f32.gmra.mrb[22].mxu0 %v239_v51 }
  0x56   : > { %622 = vmatmul.mubr.f32.gmra.mrb[22].mxu1 %v239_v51  ;;  %466 = vmatprep.mubr.f32.mxu0 %v1787_v7 }
  0x57   : > { %627 = vmatprep.mubr.f32.mxu1 %v1787_v7 }
  0x59   : > { %467 = vmatmul.mubr.f32.gmra.mrb[24].mxu0 %v240_v52 }
  0x5a   : > { %628 = vmatmul.mubr.f32.gmra.mrb[24].mxu1 %v240_v52  ;;  %472 = vmatprep.mubr.f32.mxu0 %v1787_v7 }
  0x5b   : > { %633 = vmatprep.mubr.f32.mxu1 %v1787_v7 }
  0x5d   : > { %473 = vmatmul.mubr.f32.gmra.mrb[26].mxu0 %v241_v53 }
  0x5e   : > { %634 = vmatmul.mubr.f32.gmra.mrb[26].mxu1 %v241_v53  ;;  %478 = vmatprep.mubr.f32.mxu0 %v1787_v7 }
  0x5f   : > { %639 = vmatprep.mubr.f32.mxu1 %v1787_v7 }
  0x61   : > { %479 = vmatmul.mubr.f32.gmra.mrb[28].mxu0 %v242_v54 }
  0x62   : > { %640 = vmatmul.mubr.f32.gmra.mrb[28].mxu1 %v242_v54  ;;  %484 = vmatprep.mubr.f32.mxu0 %v1787_v7 }
  0x63   : > { %645 = vmatprep.mubr.f32.mxu1 %v1787_v7  ;;  %v937_v7 = vld [vmem:[%s2513_s3 + $0xe8] sm:$0xff] }
  0x64   : > { %v1602_v61 = vpack.c.bf16 %v937_v7, %v936_v59 }
  0x65   : > { %485 = vmatmul.mubr.f32.gmra.mrb[30].mxu0 %v243_v55 }
  0x66   : > { %646 = vmatmul.mubr.f32.gmra.mrb[30].mxu1 %v243_v55  ;;  %1603 = vmatprep.subr.bf16.mxu0 %v1602_v61 }
  0x67   : > { %1605 = vmatpush3.bf16.msra.mxu0 %v1604_v1 }
  0x68   : > { %1607 = vmatprep.subr.bf16.mxu0 %v1606_v10 }
  0x6b   : > { %1609 = vmatpush3.bf16.msra.mxu0 %v1608_v14 }
  0xfc   : > { %v396_v30 = vpop.f32.mrb[0].mxu0 }
  0xfd   : > { %v397_v31 = vadd.f32 %v396_v30, %v2279_v26  ;;  %v557_v32 = vpop.f32.mrb[0].mxu1  ;;  %v398_v33 = vpop.f32.mrb[1].mxu0 }
  0xfe   : > { %v558_v34 = vadd.f32 %v557_v32, %v2281_v27  ;;  %v399_v35 = vadd.f32 %v398_v33, %v2283_v28  ;;  %v559_v36 = vpop.f32.mrb[1].mxu1 }
  0xff   : > { %v652_v37 = vmul.f32 0.5, %v397_v31  ;;  %v560_v38 = vadd.f32 %v559_v36, %v2285_v29 }
 0x100   : > { %v654_v39 = vmul.f32 0.5, %v558_v34  ;;  %v653_v40 = vmul.f32 0.5, %v399_v35  ;;  %v402_v41 = vpop.f32.mrb[2].mxu0 }
 0x101   : > { %1651 = vtanh.f32 %v652_v37  ;;  %v655_v42 = vmul.f32 0.5, %v560_v38  ;;  %v403_v43 = vadd.f32 %v402_v41, %v2279_v26  ;;  %v563_v44 = vpop.f32.mrb[2].mxu1  ;;  %v404_v45 = vpop.f32.mrb[3].mxu0 }
 0x102   : > { %1653 = vtanh.f32 %v654_v39  ;;  %v564_v46 = vadd.f32 %v563_v44, %v2281_v27  ;;  %v405_v47 = vadd.f32 %v404_v45, %v2283_v28  ;;  %v565_v48 = vpop.f32.mrb[3].mxu1 }
 0x103   : > { %1655 = vtanh.f32 %v653_v40  ;;  %v656_v49 = vmul.f32 0.5, %v403_v43  ;;  %v566_v50 = vadd.f32 %v565_v48, %v2285_v29 }
 0x104   : > { %1657 = vtanh.f32 %v655_v42  ;;  %v658_v51 = vmul.f32 0.5, %v564_v46  ;;  %v657_v52 = vmul.f32 0.5, %v405_v47  ;;  %v408_v53 = vpop.f32.mrb[4].mxu0 }
 0x105   : > { %1659 = vtanh.f32 %v656_v49  ;;  %v659_v54 = vmul.f32 0.5, %v566_v50  ;;  %v409_v55 = vadd.f32 %v408_v53, %v2279_v26  ;;  %v569_v56 = vpop.f32.mrb[4].mxu1  ;;  %v410_v57 = vpop.f32.mrb[5].mxu0 }
 0x106   : > { %1661 = vtanh.f32 %v658_v51  ;;  %v570_v58 = vadd.f32 %v569_v56, %v2281_v27  ;;  %v411_v59 = vadd.f32 %v410_v57, %v2283_v28  ;;  %v571_v7 = vpop.f32.mrb[5].mxu1 }
 0x107   : > { %1663 = vtanh.f32 %v657_v52  ;;  %v660_v60 = vmul.f32 0.5, %v409_v55  ;;  %v572_v61 = vadd.f32 %v571_v7, %v2285_v29 }
 0x108   : > { %1665 = vtanh.f32 %v659_v54  ;;  %v662_v62 = vmul.f32 0.5, %v570_v58  ;;  %v661_v63 = vmul.f32 0.5, %v411_v59  ;;  %v414_v0 = vpop.f32.mrb[6].mxu0 }
 0x109   : > { %1667 = vtanh.f32 %v660_v60  ;;  %v663_v1 = vmul.f32 0.5, %v572_v61  ;;  %v415_v2 = vadd.f32 %v414_v0, %v2279_v26  ;;  %v575_v3 = vpop.f32.mrb[6].mxu1  ;;  %v416_v4 = vpop.f32.mrb[7].mxu0 }
 0x10a   : > { %1669 = vtanh.f32 %v662_v62  ;;  %v576_v5 = vadd.f32 %v575_v3, %v2281_v27  ;;  %v417_v6 = vadd.f32 %v416_v4, %v2283_v28  ;;  %v577_v8 = vpop.f32.mrb[7].mxu1 }
 0x10b   : > { %v1652_v9 = vpop.eup %1651  ;;  %1671 = vtanh.f32 %v661_v63  ;;  %v664_v10 = vmul.f32 0.5, %v415_v2  ;;  %v578_v11 = vadd.f32 %v577_v8, %v2285_v29 }
 0x10c   : > { %v1654_v12 = vpop.eup %1653  ;;  %v780_v13 = vmul.f32 0.5, %v1652_v9  ;;  %1673 = vtanh.f32 %v663_v1  ;;  %v666_v14 = vmul.f32 0.5, %v576_v5  ;;  %v665_v15 = vmul.f32 0.5, %v417_v6  ;;  %v420_v16 = vpop.f32.mrb[8].mxu0 }
 0x10d   : > { %v1656_v17 = vpop.eup %1655  ;;  %v782_v18 = vmul.f32 0.5, %v1654_v12  ;;  %1675 = vtanh.f32 %v664_v10  ;;  %v667_v19 = vmul.f32 0.5, %v578_v11  ;;  %v421_v20 = vadd.f32 %v420_v16, %v2279_v26  ;;  %v581_v21 = vpop.f32.mrb[8].mxu1 }
 0x10e   : > { %v422_v22 = vpop.f32.mrb[9].mxu0  ;;  %v1658_v23 = vpop.eup %1657  ;;  %1677 = vtanh.f32 %v666_v14  ;;  %v582_v24 = vadd.f32 %v581_v21, %v2281_v27  ;;  %v844_v31 = vadd.f32 0.5, %v780_v13  ;;  %v781_v32 = vmul.f32 0.5, %v1656_v17 }
 0x10f   : > { %v583_v25 = vpop.f32.mrb[9].mxu1  ;;  %v1660_v30 = vpop.eup %1659  ;;  %1679 = vtanh.f32 %v665_v15  ;;  %v668_v33 = vmul.f32 0.5, %v421_v20  ;;  %v846_v35 = vadd.f32 0.5, %v782_v18  ;;  %v423_v37 = vadd.f32 %v422_v22, %v2283_v28 }
 0x110   : > { %v1662_v34 = vpop.eup %1661  ;;  %1681 = vtanh.f32 %v667_v19  ;;  %v670_v36 = vmul.f32 0.5, %v582_v24  ;;  %v426_v38 = vpop.f32.mrb[10].mxu0  ;;  %v783_v40 = vmul.f32 0.5, %v1658_v23  ;;  %v584_v41 = vadd.f32 %v583_v25, %v2285_v29 }
 0x111   : > { %v1664_v39 = vpop.eup %1663  ;;  %1683 = vtanh.f32 %v668_v33  ;;  %v427_v42 = vadd.f32 %v426_v38, %v2279_v26  ;;  %v587_v43 = vpop.f32.mrb[10].mxu1  ;;  %v784_v46 = vmul.f32 0.5, %v1660_v30  ;;  %v2308_v47 = vmul.f32 0.5, %v1662_v34 }
 0x112   : > { %v428_v44 = vpop.f32.mrb[11].mxu0  ;;  %v1666_v45 = vpop.eup %1665  ;;  %v669_v48 = vmul.f32 0.5, %v423_v37  ;;  %v588_v49 = vadd.f32 %v587_v43, %v2281_v27  ;;  %1685 = vtanh.f32 %v670_v36  ;;  %v671_v52 = vmul.f32 0.5, %v584_v41 }
 0x113   : > { %v589_v50 = vpop.f32.mrb[11].mxu1  ;;  %v1668_v51 = vpop.eup %1667  ;;  %v672_v53 = vmul.f32 0.5, %v427_v42  ;;  %v429_v54 = vadd.f32 %v428_v44, %v2283_v28  ;;  %v785_v56 = vmul.f32 0.5, %v1664_v39  ;;  %v787_v60 = vmul.f32 0.5, %v1666_v45 }
 0x114   : > { %v1670_v55 = vpop.eup %1669  ;;  %1687 = vtanh.f32 %v669_v48  ;;  %v674_v57 = vmul.f32 0.5, %v588_v49  ;;  %v590_v58 = vadd.f32 %v589_v50, %v2285_v29  ;;  %v432_v59 = vpop.f32.mrb[12].mxu0  ;;  %v845_v62 = vadd.f32 0.5, %v781_v32 }
 0x115   : > { %v1672_v7 = vpop.eup %1671  ;;  %1689 = vtanh.f32 %v671_v52  ;;  %v673_v61 = vmul.f32 0.5, %v429_v54  ;;  %v593_v63 = vpop.f32.mrb[12].mxu1  ;;  %v2313_v2 = vmul.f32 0.5, %v1668_v51  ;;  %v847_v4 = vadd.f32 0.5, %v783_v40 }
 0x116   : > { %v434_v0 = vpop.f32.mrb[13].mxu0  ;;  %v1674_v1 = vpop.eup %1673  ;;  %1691 = vtanh.f32 %v672_v53  ;;  %v675_v3 = vmul.f32 0.5, %v590_v58  ;;  %v2315_v8 = vmul.f32 0.5, %v1670_v55  ;;  %1043 = vmatprep.mubr.f32.mxu0 %v845_v62  ;;  %v433_v9 = vadd.f32 %v432_v59, %v2279_v26 }
 0x117   : > { %v595_v5 = vpop.f32.mrb[13].mxu1  ;;  %v1676_v6 = vpop.eup %1675  ;;  %1693 = vtanh.f32 %v674_v57  ;;  %v594_v10 = vadd.f32 %v593_v63, %v2281_v27  ;;  %v789_v12 = vmul.f32 0.5, %v1672_v7  ;;  %v791_v13 = vmul.f32 0.5, %v1674_v1  ;;  %1188 = vmatprep.mubr.f32.mxu1 %v847_v4  ;;  %1044 = vmatmul.mubr.f32.vlgmr.msra.gmra.mrb[32].mxu0 %v844_v31 }
 0x118   : > { %v1678_v11 = vpop.eup %1677  ;;  %v435_v14 = vadd.f32 %v434_v0, %v2283_v28  ;;  %v596_v15 = vadd.f32 %v595_v5, %v2285_v29  ;;  %v438_v16 = vpop.f32.mrb[14].mxu0  ;;  %v2321_v18 = vmul.f32 0.5, %v1676_v6  ;;  %1695 = vtanh.f32 %v673_v61  ;;  %1189 = vmatmul.mubr.f32.vlgmr.msra.gmra.mrb[32].mxu1 %v846_v35 }
 0x119   : > { %v1680_v17 = vpop.eup %1679  ;;  %v676_v19 = vmul.f32 0.5, %v433_v9  ;;  %v678_v20 = vmul.f32 0.5, %v594_v10  ;;  %v599_v21 = vpop.f32.mrb[14].mxu1  ;;  %v2323_v24 = vmul.f32 0.5, %v1678_v11  ;;  %1697 = vtanh.f32 %v675_v3 }
 0x11a   : > { %v440_v22 = vpop.f32.mrb[15].mxu0  ;;  %v1682_v23 = vpop.eup %1681  ;;  %v677_v25 = vmul.f32 0.5, %v435_v14  ;;  %v849_v30 = vadd.f32 0.5, %v785_v56  ;;  %v679_v33 = vmul.f32 0.5, %v596_v15  ;;  %v851_v34 = vadd.f32 0.5, %v787_v60 }
 0x11b   : > { %v601_v31 = vpop.f32.mrb[15].mxu1  ;;  %v1684_v32 = vpop.eup %1683  ;;  %1699 = vtanh.f32 %v676_v19  ;;  %v848_v36 = vadd.f32 0.5, %v784_v46  ;;  %v793_v37 = vmul.f32 0.5, %v1680_v17  ;;  %v850_v35 = vadd.f32 0.5, %v2308_v47 }
 0x11c   : > { %1701 = vtanh.f32 %v678_v20  ;;  %1048 = vmatprep.mubr.f32.mxu0 %v849_v30  ;;  %v439_v38 = vadd.f32 %v438_v16, %v2279_v26  ;;  %v444_v39 = vpop.f32.mrb[16].mxu0  ;;  %v1686_v40 = vpop.eup %1685  ;;  %v795_v41 = vmul.f32 0.5, %v1682_v23  ;;  %v2327_v42 = vmul.f32 0.5, %v1684_v32  ;;  %1193 = vmatprep.mubr.f32.mxu1 %v851_v34 }
 0x11d   : > { %1049 = vmatmul.mubr.f32.gmra.mrb[34].mxu0 %v848_v36  ;;  %v600_v43 = vadd.f32 %v599_v21, %v2281_v27  ;;  %v441_v44 = vadd.f32 %v440_v22, %v2283_v28  ;;  %v605_v45 = vpop.f32.mrb[16].mxu1  ;;  %v446_v46 = vpop.f32.mrb[17].mxu0  ;;  %1703 = vtanh.f32 %v677_v25  ;;  %1194 = vmatmul.mubr.f32.gmra.mrb[34].mxu1 %v850_v35  ;;  %v602_v47 = vadd.f32 %v601_v31, %v2285_v29 }
 0x11e   : > { %v1688_v48 = vpop.eup %1687  ;;  %v680_v49 = vmul.f32 0.5, %v439_v38  ;;  %v853_v50 = vadd.f32 0.5, %v789_v12  ;;  %v607_v51 = vpop.f32.mrb[17].mxu1  ;;  %1705 = vtanh.f32 %v679_v33  ;;  %v855_v55 = vadd.f32 0.5, %v791_v13 }
 0x11f   : > { %v1690_v52 = vpop.eup %1689  ;;  %v682_v53 = vmul.f32 0.5, %v600_v43  ;;  %v681_v54 = vmul.f32 0.5, %v441_v44  ;;  %v2332_v57 = vmul.f32 0.5, %v1686_v40  ;;  %v683_v58 = vmul.f32 0.5, %v602_v47 }
 0x120   : > { %v1692_v56 = vpop.eup %1691  ;;  %1707 = vtanh.f32 %v680_v49  ;;  %1053 = vmatprep.mubr.f32.mxu0 %v853_v50  ;;  %v852_v59 = vadd.f32 0.5, %v2313_v2  ;;  %v450_v7 = vpop.f32.mrb[18].mxu0  ;;  %v797_v61 = vmul.f32 0.5, %v1688_v48  ;;  %1198 = vmatprep.mubr.f32.mxu1 %v855_v55  ;;  %v854_v62 = vadd.f32 0.5, %v2315_v8 }
 0x121   : > { %v1694_v60 = vpop.eup %1693  ;;  %1709 = vtanh.f32 %v682_v53  ;;  %v445_v63 = vadd.f32 %v444_v39, %v2279_v26  ;;  %v611_v0 = vpop.f32.mrb[18].mxu1  ;;  %v799_v3 = vmul.f32 0.5, %v1690_v52  ;;  %v2337_v4 = vmul.f32 0.5, %v1692_v56 }
 0x122   : > { %v452_v1 = vpop.f32.mrb[19].mxu0  ;;  %1054 = vmatmul.mubr.f32.gmra.mrb[36].mxu0 %v852_v59  ;;  %v606_v5 = vadd.f32 %v605_v45, %v2281_v27  ;;  %v447_v6 = vadd.f32 %v446_v46, %v2283_v28  ;;  %v613_v2 = vpop.f32.mrb[19].mxu1  ;;  %v2341_v10 = vmul.f32 0.5, %v1694_v60  ;;  %1711 = vtanh.f32 %v681_v54  ;;  %1199 = vmatmul.mubr.f32.gmra.mrb[36].mxu1 %v854_v62 }
 0x123   : > { %v1696_v9 = vpop.eup %1695  ;;  %v684_v11 = vmul.f32 0.5, %v445_v63  ;;  %v608_v8 = vadd.f32 %v607_v51, %v2285_v29  ;;  %1713 = vtanh.f32 %v683_v58  ;;  %v857_v15 = vadd.f32 0.5, %v793_v37 }
 0x124   : > { %v1698_v12 = vpop.eup %1697  ;;  %v686_v13 = vmul.f32 0.5, %v606_v5  ;;  %v685_v14 = vmul.f32 0.5, %v447_v6  ;;  %v456_v16 = vpop.f32.mrb[20].mxu0  ;;  %v859_v20 = vadd.f32 0.5, %v795_v41  ;;  %v856_v21 = vadd.f32 0.5, %v2321_v18 }
 0x125   : > { %v1700_v17 = vpop.eup %1699  ;;  %1715 = vtanh.f32 %v684_v11  ;;  %v687_v19 = vmul.f32 0.5, %v608_v8  ;;  %v617_v22 = vpop.f32.mrb[20].mxu1  ;;  %v801_v30 = vmul.f32 0.5, %v1696_v9  ;;  %1058 = vmatprep.mubr.f32.mxu0 %v857_v15  ;;  %v858_v31 = vadd.f32 0.5, %v2323_v24 }
 0x126   : > { %v458_v23 = vpop.f32.mrb[21].mxu0  ;;  %v1702_v25 = vpop.eup %1701  ;;  %1717 = vtanh.f32 %v686_v13  ;;  %v451_v32 = vadd.f32 %v450_v7, %v2279_v26  ;;  %v803_v34 = vmul.f32 0.5, %v1698_v12  ;;  %v2347_v36 = vmul.f32 0.5, %v1700_v17  ;;  %1203 = vmatprep.mubr.f32.mxu1 %v859_v20  ;;  %1059 = vmatmul.mubr.f32.gmra.mrb[38].mxu0 %v856_v21 }
 0x127   : > { %v619_v33 = vpop.f32.mrb[21].mxu1  ;;  %v612_v37 = vadd.f32 %v611_v0, %v2281_v27  ;;  %v453_v18 = vadd.f32 %v452_v1, %v2283_v28  ;;  %v1704_v35 = vpop.eup %1703  ;;  %v2351_v38 = vmul.f32 0.5, %v1702_v25  ;;  %1719 = vtanh.f32 %v685_v14  ;;  %1204 = vmatmul.mubr.f32.gmra.mrb[38].mxu1 %v858_v31 }
 0x128   : > { %v688_v39 = vmul.f32 0.5, %v451_v32  ;;  %v614_v24 = vadd.f32 %v613_v2, %v2285_v29  ;;  %v462_v40 = vpop.f32.mrb[22].mxu0  ;;  %v1706_v41 = vpop.eup %1705  ;;  %1721 = vtanh.f32 %v687_v19  ;;  %v861_v45 = vadd.f32 0.5, %v797_v61 }
 0x129   : > { %v690_v43 = vmul.f32 0.5, %v612_v37  ;;  %v689_v44 = vmul.f32 0.5, %v453_v18  ;;  %v623_v46 = vpop.f32.mrb[22].mxu1  ;;  %v464_v48 = vpop.f32.mrb[23].mxu0  ;;  %v863_v50 = vadd.f32 0.5, %v799_v3  ;;  %v860_v51 = vadd.f32 0.5, %v2327_v42 }
 0x12a   : > { %v1708_v49 = vpop.eup %1707  ;;  %1723 = vtanh.f32 %v688_v39  ;;  %v691_v47 = vmul.f32 0.5, %v614_v24  ;;  %v625_v52 = vpop.f32.mrb[23].mxu1  ;;  %v805_v54 = vmul.f32 0.5, %v1704_v35  ;;  %1063 = vmatprep.mubr.f32.mxu0 %v861_v45  ;;  %v862_v55 = vadd.f32 0.5, %v2332_v57 }
 0x12b   : > { %v1710_v53 = vpop.eup %1709  ;;  %1725 = vtanh.f32 %v690_v43  ;;  %v457_v56 = vadd.f32 %v456_v16, %v2279_v26  ;;  %v807_v58 = vmul.f32 0.5, %v1706_v41  ;;  %v2357_v59 = vmul.f32 0.5, %v1708_v49  ;;  %1208 = vmatprep.mubr.f32.mxu1 %v863_v50  ;;  %1064 = vmatmul.mubr.f32.gmra.mrb[40].mxu0 %v860_v51 }
 0x12c   : > { %v618_v7 = vadd.f32 %v617_v22, %v2281_v27  ;;  %v459_v60 = vadd.f32 %v458_v23, %v2283_v28  ;;  %v468_v61 = vpop.f32.mrb[24].mxu0  ;;  %v1712_v42 = vpop.eup %1711  ;;  %v2361_v62 = vmul.f32 0.5, %v1710_v53  ;;  %1727 = vtanh.f32 %v689_v44  ;;  %1209 = vmatmul.mubr.f32.gmra.mrb[40].mxu1 %v862_v55 }
 0x12d   : > { %v692_v63 = vmul.f32 0.5, %v457_v56  ;;  %v620_v57 = vadd.f32 %v619_v33, %v2285_v29  ;;  %v629_v0 = vpop.f32.mrb[24].mxu1  ;;  %v470_v1 = vpop.f32.mrb[25].mxu0  ;;  %1729 = vtanh.f32 %v691_v47  ;;  %v865_v2 = vadd.f32 0.5, %v801_v30 }
 0x12e   : > { %v1714_v3 = vpop.eup %1713  ;;  %v694_v5 = vmul.f32 0.5, %v618_v7  ;;  %v693_v6 = vmul.f32 0.5, %v459_v60  ;;  %v631_v9 = vpop.f32.mrb[25].mxu1  ;;  %v867_v12 = vadd.f32 0.5, %v803_v34  ;;  %v864_v13 = vadd.f32 0.5, %v2337_v4 }
 0x12f   : > { %v1716_v11 = vpop.eup %1715  ;;  %1731 = vtanh.f32 %v692_v63  ;;  %v695_v8 = vmul.f32 0.5, %v620_v57  ;;  %v809_v15 = vmul.f32 0.5, %v1712_v42  ;;  %1068 = vmatprep.mubr.f32.mxu0 %v865_v2  ;;  %v866_v16 = vadd.f32 0.5, %v2341_v10 }
 0x130   : > { %v1718_v14 = vpop.eup %1717  ;;  %1733 = vtanh.f32 %v694_v5  ;;  %v463_v17 = vadd.f32 %v462_v40, %v2279_v26  ;;  %v2367_v19 = vpop.f32.mrb[26].mxu0  ;;  %v811_v20 = vmul.f32 0.5, %v1714_v3  ;;  %v2369_v21 = vmul.f32 0.5, %v1716_v11  ;;  %1213 = vmatprep.mubr.f32.mxu1 %v867_v12  ;;  %1069 = vmatmul.mubr.f32.gmra.mrb[42].mxu0 %v864_v13 }
 0x131   : > { %v624_v22 = vadd.f32 %v623_v46, %v2281_v27  ;;  %v465_v23 = vadd.f32 %v464_v48, %v2283_v28  ;;  %v2373_v4 = vpop.f32.mrb[26].mxu1  ;;  %v2375_v25 = vpop.f32.mrb[27].mxu0  ;;  %v2377_v31 = vmul.f32 0.5, %v1718_v14  ;;  %1735 = vtanh.f32 %v693_v6  ;;  %1214 = vmatmul.mubr.f32.gmra.mrb[42].mxu1 %v866_v16 }
 0x132   : > { %v1720_v30 = vpop.eup %1719  ;;  %v696_v10 = vmul.f32 0.5, %v463_v17  ;;  %v626_v32 = vadd.f32 %v625_v52, %v2285_v29  ;;  %v2380_v33 = vpop.f32.mrb[27].mxu1  ;;  %1737 = vtanh.f32 %v695_v8  ;;  %v869_v35 = vadd.f32 0.5, %v805_v54 }
 0x133   : > { %v1722_v34 = vpop.eup %1721  ;;  %v698_v37 = vmul.f32 0.5, %v624_v22  ;;  %v697_v18 = vmul.f32 0.5, %v465_v23  ;;  %v871_v40 = vadd.f32 0.5, %v807_v58  ;;  %v868_v41 = vadd.f32 0.5, %v2347_v36 }
 0x134   : > { %v1724_v39 = vpop.eup %1723  ;;  %1739 = vtanh.f32 %v696_v10  ;;  %v699_v24 = vmul.f32 0.5, %v626_v32  ;;  %v2383_v43 = vpop.f32.mrb[28].mxu0  ;;  %v813_v45 = vmul.f32 0.5, %v1720_v30  ;;  %1073 = vmatprep.mubr.f32.mxu0 %v869_v35  ;;  %v870_v46 = vadd.f32 0.5, %v2351_v38 }
 0x135   : > { %v1726_v44 = vpop.eup %1725  ;;  %1741 = vtanh.f32 %v698_v37  ;;  %v469_v48 = vadd.f32 %v468_v61, %v2279_v26  ;;  %v2387_v49 = vpop.f32.mrb[28].mxu1  ;;  %v815_v50 = vmul.f32 0.5, %v1722_v34  ;;  %v2391_v51 = vmul.f32 0.5, %v1724_v39  ;;  %1218 = vmatprep.mubr.f32.mxu1 %v871_v40  ;;  %1074 = vmatmul.mubr.f32.gmra.mrb[44].mxu0 %v868_v41 }
 0x136   : > { %v2389_v47 = vpop.f32.mrb[29].mxu0  ;;  %v630_v36 = vadd.f32 %v629_v0, %v2281_v27  ;;  %v471_v52 = vadd.f32 %v470_v1, %v2283_v28  ;;  %v2395_v53 = vpop.f32.mrb[29].mxu1  ;;  %v2397_v55 = vmul.f32 0.5, %v1726_v44  ;;  %1743 = vtanh.f32 %v697_v18  ;;  %1219 = vmatmul.mubr.f32.gmra.mrb[44].mxu1 %v870_v46 }
 0x137   : > { %v1728_v54 = vpop.eup %1727  ;;  %v700_v38 = vmul.f32 0.5, %v469_v48  ;;  %v632_v56 = vadd.f32 %v631_v9, %v2285_v29  ;;  %1745 = vtanh.f32 %v699_v24  ;;  %v873_v61 = vadd.f32 0.5, %v809_v15 }
 0x138   : > { %v1730_v58 = vpop.eup %1729  ;;  %v702_v7 = vmul.f32 0.5, %v630_v36  ;;  %v701_v60 = vmul.f32 0.5, %v471_v52  ;;  %v2400_v42 = vpop.f32.mrb[30].mxu0  ;;  %v875_v0 = vadd.f32 0.5, %v811_v20  ;;  %v872_v1 = vadd.f32 0.5, %v2357_v59 }
 0x139   : > { %v1732_v63 = vpop.eup %1731  ;;  %1747 = vtanh.f32 %v700_v38  ;;  %v703_v57 = vmul.f32 0.5, %v632_v56  ;;  %v2403_v3 = vpop.f32.mrb[30].mxu1  ;;  %v817_v2 = vmul.f32 0.5, %v1728_v54  ;;  %1078 = vmatprep.mubr.f32.mxu0 %v873_v61  ;;  %v874_v9 = vadd.f32 0.5, %v2361_v62 }
 0x13a   : > { %v2405_v5 = vpop.f32.mrb[31].mxu0  ;;  %v1734_v6 = vpop.eup %1733  ;;  %1749 = vtanh.f32 %v702_v7  ;;  %v475_v11 = vadd.f32 %v2367_v19, %v2279_v26  ;;  %v819_v12 = vmul.f32 0.5, %v1730_v58  ;;  %1223 = vmatprep.mubr.f32.mxu1 %v875_v0  ;;  %1079 = vmatmul.mubr.f32.gmra.mrb[46].mxu0 %v872_v1  ;;  %v636_v59 = vadd.f32 %v2373_v4, %v2281_v27 }
 0x13b   : > { %v2410_v8 = vpop.f32.mrb[31].mxu1  ;;  %1751 = vtanh.f32 %v701_v60  ;;  %v477_v13 = vadd.f32 %v2375_v25, %v2283_v28  ;;  %v1736_v14 = vpop.eup %1735  ;;  %v2416_v15 = vmul.f32 0.5, %v1732_v63  ;;  %1224 = vmatmul.mubr.f32.gmra.mrb[46].mxu1 %v874_v9  ;;  %v638_v16 = vadd.f32 %v2380_v33, %v2285_v29 }
 0x13c   : > { %1753 = vtanh.f32 %v703_v57  ;;  %v704_v62 = vmul.f32 0.5, %v475_v11  ;;  %v1738_v17 = vpop.eup %1737  ;;  %v2420_v19 = vmul.f32 0.5, %v1734_v6  ;;  %v706_v20 = vmul.f32 0.5, %v636_v59 }
 0x13d   : > { %v705_v22 = vmul.f32 0.5, %v477_v13  ;;  %v877_v23 = vadd.f32 0.5, %v813_v45  ;;  %v707_v4 = vmul.f32 0.5, %v638_v16  ;;  %v879_v10 = vadd.f32 0.5, %v815_v50 }
 0x13e   : > { %v1740_v30 = vpop.eup %1739  ;;  %1755 = vtanh.f32 %v704_v62  ;;  %v876_v25 = vadd.f32 0.5, %v2369_v21  ;;  %v821_v34 = vmul.f32 0.5, %v1736_v14  ;;  %v878_v37 = vadd.f32 0.5, %v2377_v31 }
 0x13f   : > { %v1742_v32 = vpop.eup %1741  ;;  %1757 = vtanh.f32 %v706_v20  ;;  %1083 = vmatprep.mubr.f32.mxu0 %v877_v23  ;;  %v481_v33 = vadd.f32 %v2383_v43, %v2279_v26  ;;  %v823_v18 = vmul.f32 0.5, %v1738_v17  ;;  %1228 = vmatprep.mubr.f32.mxu1 %v879_v10  ;;  %v642_v35 = vadd.f32 %v2387_v49, %v2281_v27 }
 0x140   : > { %1759 = vtanh.f32 %v705_v22  ;;  %1084 = vmatmul.mubr.f32.gmra.mrb[48].mxu0 %v876_v25  ;;  %v483_v39 = vadd.f32 %v2389_v47, %v2283_v28  ;;  %v1744_v21 = vpop.eup %1743  ;;  %v2430_v24 = vmul.f32 0.5, %v1740_v30  ;;  %1229 = vmatmul.mubr.f32.gmra.mrb[48].mxu1 %v878_v37  ;;  %v644_v31 = vadd.f32 %v2395_v53, %v2285_v29 }
 0x141   : > { %1761 = vtanh.f32 %v707_v4  ;;  %v708_v40 = vmul.f32 0.5, %v481_v33  ;;  %v1746_v41 = vpop.eup %1745  ;;  %v826_v43 = vmul.f32 0.5, %v1742_v32  ;;  %v710_v44 = vmul.f32 0.5, %v642_v35 }
 0x142   : > { %v709_v45 = vmul.f32 0.5, %v483_v39  ;;  %v881_v46 = vadd.f32 0.5, %v817_v2  ;;  %v711_v49 = vmul.f32 0.5, %v644_v31  ;;  %v883_v50 = vadd.f32 0.5, %v819_v12 }
 0x143   : > { %v1748_v48 = vpop.eup %1747  ;;  %1763 = vtanh.f32 %v708_v40  ;;  %v880_v47 = vadd.f32 0.5, %v2391_v51  ;;  %v825_v52 = vmul.f32 0.5, %v1744_v21  ;;  %v882_v54 = vadd.f32 0.5, %v2397_v55 }
 0x144   : > { %v1750_v36 = vpop.eup %1749  ;;  %1765 = vtanh.f32 %v710_v44  ;;  %1088 = vmatprep.mubr.f32.mxu0 %v881_v46  ;;  %v487_v53 = vadd.f32 %v2400_v42, %v2279_v26  ;;  %v827_v56 = vmul.f32 0.5, %v1746_v41  ;;  %1233 = vmatprep.mubr.f32.mxu1 %v883_v50  ;;  %v648_v58 = vadd.f32 %v2403_v3, %v2281_v27 }
 0x145   : > { %v1752_v38 = vpop.eup %1751  ;;  %1767 = vtanh.f32 %v709_v45  ;;  %1089 = vmatmul.mubr.f32.gmra.mrb[50].mxu0 %v880_v47  ;;  %v489_v51 = vadd.f32 %v2405_v5, %v2283_v28  ;;  %1234 = vmatmul.mubr.f32.gmra.mrb[50].mxu1 %v882_v54  ;;  %v650_v55 = vadd.f32 %v2410_v8, %v2285_v29  ;;  %v885_v57 = vadd.f32 0.5, %v821_v34 }
 0x146   : > { %v1754_v7 = vpop.eup %1753  ;;  %v829_v60 = vmul.f32 0.5, %v1752_v38  ;;  %1769 = vtanh.f32 %v711_v49  ;;  %v712_v61 = vmul.f32 0.5, %v487_v53  ;;  %v714_v42 = vmul.f32 0.5, %v648_v58  ;;  %v2450_v38 = vld [vmem:[%s2514_s4] ss:$0 sm:$0xff] }
 0x147   : > { %v831_v26 = vmul.f32 0.5, %v1754_v7  ;;  %v713_v63 = vmul.f32 0.5, %v489_v51  ;;  %v715_v1 = vmul.f32 0.5, %v650_v55  ;;  %v887_v6 = vadd.f32 0.5, %v823_v18  ;;  %1093 = vmatprep.mubr.f32.mxu0 %v885_v57 }
 0x148   : > { %v1756_v0 = vpop.eup %1755  ;;  %1771 = vtanh.f32 %v712_v61  ;;  %v884_v27 = vadd.f32 0.5, %v2416_v15  ;;  %v886_v28 = vadd.f32 0.5, %v2420_v19  ;;  %v889_v5 = vadd.f32 0.5, %v825_v52 }
 0x149   : > { %v1758_v3 = vpop.eup %1757  ;;  %1773 = vtanh.f32 %v714_v42  ;;  %v830_v9 = vmul.f32 0.5, %v1750_v36  ;;  %1238 = vmatprep.mubr.f32.mxu1 %v887_v6  ;;  %v891_v29 = vadd.f32 0.5, %v827_v56  ;;  %v890_v12 = vadd.f32 0.5, %v826_v43 }
 0x14a   : > { %v1760_v2 = vpop.eup %1759  ;;  %1775 = vtanh.f32 %v713_v63  ;;  %1094 = vmatmul.mubr.f32.gmra.mrb[52].mxu0 %v884_v27  ;;  %1239 = vmatmul.mubr.f32.gmra.mrb[52].mxu1 %v886_v28  ;;  %v893_v59 = vadd.f32 0.5, %v829_v60  ;;  %v828_v13 = vmul.f32 0.5, %v1748_v48  ;;  %v888_v15 = vadd.f32 0.5, %v2430_v24 }
 0x14b   : > { %v1762_v11 = vpop.eup %1761  ;;  %v833_v8 = vmul.f32 0.5, %v1760_v2  ;;  %1777 = vtanh.f32 %v715_v1  ;;  %1098 = vmatprep.mubr.f32.mxu0 %v889_v5  ;;  %1243 = vmatprep.mubr.f32.mxu1 %v891_v29  ;;  %v895_v62 = vadd.f32 0.5, %v831_v26  ;;  %v834_v20 = vmul.f32 0.5, %v1758_v3 }
 0x14c   : > { %v835_v14 = vmul.f32 0.5, %v1762_v11  ;;  %v894_v22 = vadd.f32 0.5, %v830_v9  ;;  %v832_v4 = vmul.f32 0.5, %v1756_v0  ;;  %v892_v25 = vadd.f32 0.5, %v828_v13 }
 0x14d   : > { %v1764_v16 = vpop.eup %1763  ;;  %v897_v23 = vadd.f32 0.5, %v833_v8  ;;  %v898_v35 = vadd.f32 0.5, %v834_v20 }
 0x14e   : > { %v1766_v17 = vpop.eup %1765  ;;  %1099 = vmatmul.mubr.f32.gmra.mrb[54].mxu0 %v888_v15  ;;  %1244 = vmatmul.mubr.f32.gmra.mrb[54].mxu1 %v890_v12  ;;  %v899_v32 = vadd.f32 0.5, %v835_v14  ;;  %v836_v24 = vmul.f32 0.5, %v1764_v16  ;;  %v896_v40 = vadd.f32 0.5, %v832_v4 }
 0x14f   : > { %v1768_v19 = vpop.eup %1767  ;;  %1103 = vmatprep.mubr.f32.mxu0 %v893_v59  ;;  %1248 = vmatprep.mubr.f32.mxu1 %v895_v62  ;;  %v838_v18 = vmul.f32 0.5, %v1766_v17 }
 0x150   : > { %v1770_v30 = vpop.eup %1769  ;;  %v837_v10 = vmul.f32 0.5, %v1768_v19  ;;  %v900_v50 = vadd.f32 0.5, %v836_v24 }
 0x151   : > { %v839_v34 = vmul.f32 0.5, %v1770_v30  ;;  %v902_v46 = vadd.f32 0.5, %v838_v18 }
 0x152   : > { %v1772_v37 = vpop.eup %1771  ;;  %1104 = vmatmul.mubr.f32.gmra.mrb[56].mxu0 %v892_v25  ;;  %1249 = vmatmul.mubr.f32.gmra.mrb[56].mxu1 %v894_v22  ;;  %v901_v39 = vadd.f32 0.5, %v837_v10 }
 0x153   : > { %v1774_v33 = vpop.eup %1773  ;;  %1108 = vmatprep.mubr.f32.mxu0 %v897_v23  ;;  %1253 = vmatprep.mubr.f32.mxu1 %v899_v32  ;;  %v903_v31 = vadd.f32 0.5, %v839_v34  ;;  %v840_v49 = vmul.f32 0.5, %v1772_v37 }
 0x154   : > { %v1776_v21 = vpop.eup %1775  ;;  %v842_v45 = vmul.f32 0.5, %v1774_v33 }
 0x155   : > { %v1778_v41 = vpop.eup %1777  ;;  %v841_v43 = vmul.f32 0.5, %v1776_v21  ;;  %v904_v52 = vadd.f32 0.5, %v840_v49 }
 0x156   : > { %v843_v44 = vmul.f32 0.5, %v1778_v41  ;;  %1109 = vmatmul.mubr.f32.gmra.mrb[58].mxu0 %v896_v40  ;;  %1254 = vmatmul.mubr.f32.gmra.mrb[58].mxu1 %v898_v35  ;;  %v906_v36 = vadd.f32 0.5, %v842_v45 }
 0x157   : > { %1113 = vmatprep.mubr.f32.mxu0 %v901_v39  ;;  %v905_v48 = vadd.f32 0.5, %v841_v43  ;;  %1258 = vmatprep.mubr.f32.mxu1 %v903_v31 }
 0x158   : > { %v907_v47 = vadd.f32 0.5, %v843_v44 }
 0x15a   : > { %1114 = vmatmul.mubr.f32.gmra.mrb[60].mxu0 %v900_v50  ;;  %1259 = vmatmul.mubr.f32.gmra.mrb[60].mxu1 %v902_v46 }
 0x15b   : > { %1118 = vmatprep.mubr.f32.mxu0 %v905_v48  ;;  %1263 = vmatprep.mubr.f32.mxu1 %v907_v47 }
 0x15e   : > { %1119 = vmatmul.mubr.f32.gmra.mrb[62].mxu0 %v904_v52  ;;  %1264 = vmatmul.mubr.f32.gmra.mrb[62].mxu1 %v906_v36 }
 0x1ea   : > { %v1386_v54 = vpop.f32.mrb[32].mxu0 }
 0x1eb   : > { %v1466_v53 = vpop.f32.mrb[32].mxu1  ;;  %v1387_v56 = vpop.f32.mrb[33].mxu0 }
 0x1ec   : > { %v1388_v58 = vadd.f32 %v1387_v56, %v1386_v54  ;;  %v1467_v51 = vpop.f32.mrb[33].mxu1 }
 0x1ed   : > { %v1468_v7 = vadd.f32 %v1467_v51, %v1466_v53 }
 0x1ee   : > { %v1046_v60 = vadd.f32 %v1388_v58, %v2450_v38 }
 0x1f0   : > { %v1389_v61 = vpop.f32.mrb[34].mxu0  ;;  %v1191_v55 = vadd.f32 %v1468_v7, %v1046_v60  ;;  %v1469_v26 = vpop.f32.mrb[34].mxu1 }
 0x1f1   : > { %v1390_v42 = vpop.f32.mrb[35].mxu0  ;;  %v1470_v57 = vpop.f32.mrb[35].mxu1 }
 0x1f2   : > { %v1391_v63 = vadd.f32 %v1390_v42, %v1389_v61  ;;  %1270 = vst.msk [vmem:[%s2458_s20] sm:$0xff] %vm1269_vm0, %v1191_v55  ;;  %v1471_v0 = vadd.f32 %v1470_v57, %v1469_v26 }
 0x1f4   : > { %v1051_v1 = vadd.f32 %v1391_v63, %v2450_v38 }
 0x1f5   : > { %v1392_v6 = vpop.f32.mrb[36].mxu0  ;;  %v1472_v3 = vpop.f32.mrb[36].mxu1 }
 0x1f6   : > { %v1196_v27 = vadd.f32 %v1471_v0, %v1051_v1  ;;  %v1393_v28 = vpop.f32.mrb[37].mxu0  ;;  %v1473_v2 = vpop.f32.mrb[37].mxu1 }
 0x1f7   : > { %v1394_v5 = vadd.f32 %v1393_v28, %v1392_v6  ;;  %v1474_v9 = vadd.f32 %v1473_v2, %v1472_v3 }
 0x1f8   : > { %1271 = vst.msk [vmem:[%s2458_s20 + $0x8] sm:$0xff] %vm1269_vm0, %v1196_v27 }
 0x1f9   : > { %v1056_v29 = vadd.f32 %v1394_v5, %v2450_v38  ;;  %v1395_v11 = vpop.f32.mrb[38].mxu0 }
 0x1fa   : > { %v1475_v12 = vpop.f32.mrb[38].mxu1  ;;  %v1396_v59 = vpop.f32.mrb[39].mxu0 }
 0x1fb   : > { %v1201_v8 = vadd.f32 %v1474_v9, %v1056_v29  ;;  %v1397_v13 = vadd.f32 %v1396_v59, %v1395_v11  ;;  %v1476_v14 = vpop.f32.mrb[39].mxu1 }
 0x1fc   : > { %v1477_v15 = vadd.f32 %v1476_v14, %v1475_v12 }
 0x1fd   : > { %1272 = vst.msk [vmem:[%s2458_s20 + $0x10] sm:$0xff] %vm1269_vm0, %v1201_v8  ;;  %v1061_v62 = vadd.f32 %v1397_v13, %v2450_v38 }
 0x1fe   : > { %v1398_v16 = vpop.f32.mrb[40].mxu0 }
 0x1ff   : > { %v1206_v17 = vadd.f32 %v1477_v15, %v1061_v62  ;;  %v1478_v19 = vpop.f32.mrb[40].mxu1  ;;  %v1399_v20 = vpop.f32.mrb[41].mxu0 }
 0x200   : > { %v1400_v22 = vadd.f32 %v1399_v20, %v1398_v16  ;;  %v1479_v23 = vpop.f32.mrb[41].mxu1 }
 0x201   : > { %1273 = vst.msk [vmem:[%s2458_s20 + $0x18] sm:$0xff] %vm1269_vm0, %v1206_v17  ;;  %v1480_v30 = vadd.f32 %v1479_v23, %v1478_v19 }
 0x202   : > { %v1066_v4 = vadd.f32 %v1400_v22, %v2450_v38 }
 0x203   : > { %v1401_v10 = vpop.f32.mrb[42].mxu0 }
 0x204   : > { %v1211_v25 = vadd.f32 %v1480_v30, %v1066_v4  ;;  %v1481_v32 = vpop.f32.mrb[42].mxu1  ;;  %v1402_v34 = vpop.f32.mrb[43].mxu0 }
 0x205   : > { %v1403_v37 = vadd.f32 %v1402_v34, %v1401_v10  ;;  %v1482_v33 = vpop.f32.mrb[43].mxu1 }
 0x206   : > { %1274 = vst.msk [vmem:[%s2458_s20 + $0x20] sm:$0xff] %vm1269_vm0, %v1211_v25  ;;  %v1483_v18 = vadd.f32 %v1482_v33, %v1481_v32 }
 0x207   : > { %v1071_v35 = vadd.f32 %v1403_v37, %v2450_v38 }
 0x208   : > { %v1404_v39 = vpop.f32.mrb[44].mxu0 }
 0x209   : > { %v1216_v21 = vadd.f32 %v1483_v18, %v1071_v35  ;;  %v1484_v24 = vpop.f32.mrb[44].mxu1  ;;  %v1405_v40 = vpop.f32.mrb[45].mxu0 }
 0x20a   : > { %v1406_v31 = vadd.f32 %v1405_v40, %v1404_v39  ;;  %v1485_v41 = vpop.f32.mrb[45].mxu1 }
 0x20b   : > { %1275 = vst.msk [vmem:[%s2458_s20 + $0x28] sm:$0xff] %vm1269_vm0, %v1216_v21  ;;  %v1486_v43 = vadd.f32 %v1485_v41, %v1484_v24 }
 0x20c   : > { %v1076_v44 = vadd.f32 %v1406_v31, %v2450_v38 }
 0x20d   : > { %v1407_v45 = vpop.f32.mrb[46].mxu0 }
 0x20e   : > { %v1221_v46 = vadd.f32 %v1486_v43, %v1076_v44  ;;  %v1487_v48 = vpop.f32.mrb[46].mxu1  ;;  %v1408_v49 = vpop.f32.mrb[47].mxu0 }
 0x20f   : > { %v1409_v50 = vadd.f32 %v1408_v49, %v1407_v45  ;;  %v1488_v47 = vpop.f32.mrb[47].mxu1 }
 0x210   : > { %1276 = vst.msk [vmem:[%s2458_s20 + $0x30] sm:$0xff] %vm1269_vm0, %v1221_v46  ;;  %v1489_v36 = vadd.f32 %v1488_v47, %v1487_v48 }
 0x211   : > { %v1081_v52 = vadd.f32 %v1409_v50, %v2450_v38 }
 0x213   : > { %v1410_v54 = vpop.f32.mrb[48].mxu0  ;;  %v1226_v53 = vadd.f32 %v1489_v36, %v1081_v52  ;;  %v1490_v56 = vpop.f32.mrb[48].mxu1 }
 0x214   : > { %v1411_v58 = vpop.f32.mrb[49].mxu0  ;;  %v1491_v7 = vpop.f32.mrb[49].mxu1 }
 0x215   : > { %v1412_v51 = vadd.f32 %v1411_v58, %v1410_v54  ;;  %1277 = vst.msk [vmem:[%s2458_s20 + $0x38] sm:$0xff] %vm1269_vm0, %v1226_v53  ;;  %v1492_v60 = vadd.f32 %v1491_v7, %v1490_v56 }
 0x217   : > { %v1086_v61 = vadd.f32 %v1412_v51, %v2450_v38 }
 0x218   : > { %v1413_v55 = vpop.f32.mrb[50].mxu0  ;;  %v1493_v42 = vpop.f32.mrb[50].mxu1 }
 0x219   : > { %v1231_v26 = vadd.f32 %v1492_v60, %v1086_v61  ;;  %v1414_v63 = vpop.f32.mrb[51].mxu0  ;;  %v1494_v0 = vpop.f32.mrb[51].mxu1 }
 0x21a   : > { %v1415_v57 = vadd.f32 %v1414_v63, %v1413_v55  ;;  %v1495_v1 = vadd.f32 %v1494_v0, %v1493_v42 }
 0x21b   : > { %1278 = vst.msk [vmem:[%s2458_s20 + $0x40] sm:$0xff] %vm1269_vm0, %v1231_v26 }
 0x21c   : > { %v1091_v6 = vadd.f32 %v1415_v57, %v2450_v38 }
 0x21d   : > { %v1416_v27 = vpop.f32.mrb[52].mxu0  ;;  %v1496_v28 = vpop.f32.mrb[52].mxu1 }
 0x21e   : > { %v1236_v3 = vadd.f32 %v1495_v1, %v1091_v6  ;;  %v1417_v5 = vpop.f32.mrb[53].mxu0  ;;  %v1497_v9 = vpop.f32.mrb[53].mxu1 }
 0x21f   : > { %v1418_v2 = vadd.f32 %v1417_v5, %v1416_v27  ;;  %v1498_v29 = vadd.f32 %v1497_v9, %v1496_v28 }
 0x220   : > { %1279 = vst.msk [vmem:[%s2458_s20 + $0x48] sm:$0xff] %vm1269_vm0, %v1236_v3 }
 0x221   : > { %v1096_v11 = vadd.f32 %v1418_v2, %v2450_v38  ;;  %v1419_v8 = vpop.f32.mrb[54].mxu0  ;;  %v1499_v12 = vpop.f32.mrb[54].mxu1 }
 0x222   : > { %v1420_v59 = vpop.f32.mrb[55].mxu0  ;;  %v1500_v15 = vpop.f32.mrb[55].mxu1 }
 0x223   : > { %v1241_v13 = vadd.f32 %v1498_v29, %v1096_v11  ;;  %v1421_v14 = vadd.f32 %v1420_v59, %v1419_v8  ;;  %v1501_v62 = vadd.f32 %v1500_v15, %v1499_v12 }
 0x225   : > { %1280 = vst.msk [vmem:[%s2458_s20 + $0x50] sm:$0xff] %vm1269_vm0, %v1241_v13  ;;  %v1101_v16 = vadd.f32 %v1421_v14, %v2450_v38  ;;  %v1422_v17 = vpop.f32.mrb[56].mxu0  ;;  %v1502_v19 = vpop.f32.mrb[56].mxu1 }
 0x226   : > { %v1423_v20 = vpop.f32.mrb[57].mxu0  ;;  %v1503_v30 = vpop.f32.mrb[57].mxu1 }
 0x227   : > { %v1246_v22 = vadd.f32 %v1501_v62, %v1101_v16  ;;  %v1424_v23 = vadd.f32 %v1423_v20, %v1422_v17  ;;  %v1504_v4 = vadd.f32 %v1503_v30, %v1502_v19 }
 0x229   : > { %1281 = vst.msk [vmem:[%s2458_s20 + $0x58] sm:$0xff] %vm1269_vm0, %v1246_v22  ;;  %v1106_v10 = vadd.f32 %v1424_v23, %v2450_v38  ;;  %v1425_v25 = vpop.f32.mrb[58].mxu0  ;;  %v1505_v32 = vpop.f32.mrb[58].mxu1 }
 0x22a   : > { %v1426_v34 = vpop.f32.mrb[59].mxu0  ;;  %v1506_v18 = vpop.f32.mrb[59].mxu1 }
 0x22b   : > { %v1251_v37 = vadd.f32 %v1504_v4, %v1106_v10  ;;  %v1427_v33 = vadd.f32 %v1426_v34, %v1425_v25  ;;  %v1507_v35 = vadd.f32 %v1506_v18, %v1505_v32 }
 0x22d   : > { %1282 = vst.msk [vmem:[%s2458_s20 + $0x60] sm:$0xff] %vm1269_vm0, %v1251_v37  ;;  %v1111_v39 = vadd.f32 %v1427_v33, %v2450_v38  ;;  %v1428_v21 = vpop.f32.mrb[60].mxu0  ;;  %v1508_v24 = vpop.f32.mrb[60].mxu1 }
 0x22e   : > { %v1429_v40 = vpop.f32.mrb[61].mxu0  ;;  %v1509_v43 = vpop.f32.mrb[61].mxu1 }
 0x22f   : > { %v1256_v31 = vadd.f32 %v1507_v35, %v1111_v39  ;;  %v1430_v41 = vadd.f32 %v1429_v40, %v1428_v21  ;;  %v1510_v44 = vadd.f32 %v1509_v43, %v1508_v24 }
 0x231   : > { %1283 = vst.msk [vmem:[%s2458_s20 + $0x68] sm:$0xff] %vm1269_vm0, %v1256_v31  ;;  %v1116_v45 = vadd.f32 %v1430_v41, %v2450_v38  ;;  %v1431_v46 = vpop.f32.mrb[62].mxu0  ;;  %v1511_v48 = vpop.f32.mrb[62].mxu1 }
 0x232   : > { %v1432_v49 = vpop.f32.mrb[63].mxu0  ;;  %v1512_v36 = vpop.f32.mrb[63].mxu1 }
 0x233   : > { %v1261_v50 = vadd.f32 %v1510_v44, %v1116_v45  ;;  %v1433_v47 = vadd.f32 %v1432_v49, %v1431_v46  ;;  %v1513_v52 = vadd.f32 %v1512_v36, %v1511_v48 }
 0x235   : > { %1284 = vst.msk [vmem:[%s2458_s20 + $0x70] sm:$0xff] %vm1269_vm0, %v1261_v50  ;;  %v1121_v54 = vadd.f32 %v1433_v47, %v2450_v38 }
 0x237   : > { %v1266_v53 = vadd.f32 %v1513_v52, %v1121_v54 }
 0x239   : > { %1285 = vst.msk [vmem:[%s2458_s20 + $0x78] sm:$0xff] %vm1269_vm0, %v1266_v53 }
 0x23a PF: > { %s15_s18 = sadd.s32 1, %s1785_s18  }
 0x23b   : > { %p12_p4 = scmp.ge.s32.totalorder %s15_s18, 4  }
 0x23d   :  { %14 = sbr.rel (!%p12_p4) target bundleno = 1 (0x1), region = 70 }

</bundles_post_ra>
